<compile_context>
chip_gen: v6e
topology: v6e:2x2x1
jax: 0.10.0
libtpu: 0.0.40
codegen_flags: <defaults>
</compile_context>

<pallas_src>
import functools

import jax
import jax.numpy as jnp
from jax.experimental import pallas as pl
from jax.experimental.pallas import tpu as pltpu


def _round_up(x, m):
    return ((x + m - 1) // m) * m


def _atom_encoder_kernel(x_ref, tbl_ref, o_ref, *, num_feat, vocab_pad):
    """x_ref:   (tile_n, F) int32 raw indices (NOT pre-offset).
       tbl_ref: (F, V_pad, E) float32, resident in VMEM (single-buffered).
       o_ref:   (tile_n, E) float32."""
    tile_n = x_ref.shape[0]
    emb_dim = tbl_ref.shape[-1]

    x = x_ref[...]                                                 # (tile_n, F)
    # Single lane-dense iota, hoisted out of the (static, unrolled) feature loop.
    col = jax.lax.broadcasted_iota(jnp.int32, (tile_n, vocab_pad), 1)

    acc = jnp.zeros((tile_n, emb_dim), jnp.float32)
    for f in range(num_feat):  # F is small and static -> unrolled
        # One compare per one-hot element, over this feature's band only.
        onehot_f = (col == x[:, f:f + 1]).astype(tbl_ref.dtype)    # (tile_n, V_pad)
        # MXU: (tile_n, V_pad) @ (V_pad, E), f32 accumulate in registers.
        acc = acc + jnp.dot(onehot_f, tbl_ref[f],
                            preferred_element_type=jnp.float32)
    o_ref[...] = acc.astype(o_ref.dtype)


def atom_encoder_pallas(x, tables, *, tile_n=None):
    """x: (N, F) integer indices; tables: (F, V_pad, E) float32 -> (N, E) float32."""
    n, num_feat = x.shape
    f_t, vocab_pad, emb_dim = tables.shape
    assert f_t == num_feat
    assert vocab_pad % 128 == 0, "pad the per-feature vocab to a multiple of 128"

    x = x.astype(jnp.int32)  # no-op for int32 inputs

    # Row tiling: ~4 grid steps (keeps both v7x TCs busy) but never below 256
    # rows (amortize ~0.35us/step) nor above 1024; wrapper pads N.
    if tile_n is None:
        tile_n = min(1024, max(256, _round_up(pl.cdiv(n, 4), 256)))
    tile_n = max(8, min(_round_up(tile_n, 8), _round_up(n, 8)))
    n_pad = _round_up(n, tile_n)
    if n_pad != n:
        # Pad index = -1: matches no one-hot column -> padded rows are exact 0.
        x = jnp.pad(x, ((0, n_pad - n), (0, 0)), constant_values=-1)

    # VMEM budget: resident table (single buffer) + double-buffered x/out tiles
    # + per-band one-hot / matmul temporaries.  Request 1.5x with an 8 MiB
    # floor, capped at 48 MiB (never the full 64 MiB of a v7x TC).
    i32, f32 = 4, 4
    footprint = (
        num_feat * vocab_pad * emb_dim * f32       # resident stacked table
        + 2 * tile_n * num_feat * i32              # x tiles (double-buffered)
        + 2 * tile_n * emb_dim * f32               # out tiles (double-buffered)
        + 3 * tile_n * vocab_pad * f32             # iota / compare / one-hot band
        + 2 * tile_n * emb_dim * f32               # matmul partial + accumulator
    )
    vmem_limit = int(min(max(1.5 * footprint, 8 * 1024 * 1024), 48 * 1024 * 1024))

    kernel = functools.partial(
        _atom_encoder_kernel, num_feat=num_feat, vocab_pad=vocab_pad)

    out = pl.pallas_call(
        kernel,
        out_shape=jax.ShapeDtypeStruct((n_pad, emb_dim), jnp.float32),
        grid_spec=pltpu.PrefetchScalarGridSpec(
            num_scalar_prefetch=0,
            grid=(n_pad // tile_n,),
            in_specs=[
                pl.BlockSpec((tile_n, num_feat), lambda i: (i, 0)),
                # Whole stacked table resident in VMEM: single-buffered, its
                # contents never change across the row-tile grid.
                pl.BlockSpec(memory_space=pltpu.MemorySpace.VMEM),
            ],
            out_specs=pl.BlockSpec((tile_n, emb_dim), lambda i: (i, 0)),
        ),
        compiler_params=pltpu.CompilerParams(
            dimension_semantics=("parallel",),
            vmem_limit_bytes=vmem_limit,
        ),
    )(x, tables)
    return out[:n]


def make_embedding_tables(key, feature_dims, emb_dim, vocab_pad=None):
    """Xavier-uniform init per table (matches torch.nn.init.xavier_uniform_),
    zero-padded to a common lane-dense vocab and stacked to (F, V_pad, E)."""
    if vocab_pad is None:
        vocab_pad = _round_up(max(feature_dims), 128)
    assert vocab_pad >= max(feature_dims) and vocab_pad % 128 == 0
    tables = []
    for i, dim in enumerate(feature_dims):
        k = jax.random.fold_in(key, i)
        bound = (6.0 / (dim + emb_dim)) ** 0.5
        w = jax.random.uniform(k, (dim, emb_dim), jnp.float32, -bound, bound)
        w = jnp.pad(w, ((0, vocab_pad - dim), (0, 0)))  # zero rows beyond vocab
        tables.append(w)
    return jnp.stack(tables, axis=0)


if __name__ == "__main__":
    key = jax.random.PRNGKey(0)

    # Small synthetic config (stand-in for get_atom_feature_dims()).
    feature_dims = [13, 7, 9, 5]   # per-feature vocab sizes
    emb_dim = 128                  # multiple of 128 -> lane-dense output stores
    n_nodes = 1000                 # padded to 1024 -> 4 row tiles of 256

    k_tbl, k_x = jax.random.split(key)
    tables = make_embedding_tables(k_tbl, feature_dims, emb_dim)  # (F, 128, 128)

    # Categorical atom features: x[:, i] in [0, feature_dims[i])
    cols = []
    for i, dim in enumerate(feature_dims):
        cols.append(
            jax.random.randint(jax.random.fold_in(k_x, i), (n_nodes,), 0, dim, jnp.int32)
        )
    x = jnp.stack(cols, axis=1)  # (N, F) int32

    out = atom_encoder_pallas(x, tables)
    out = jax.block_until_ready(out)

    # Pure-JAX reference: sum_i table_i[x[:, i]]
    ref = jnp.zeros((n_nodes, emb_dim), jnp.float32)
    for i in range(len(feature_dims)):
        ref = ref + jnp.take(tables[i], x[:, i], axis=0)
    assert out.shape == (n_nodes, emb_dim)
    assert jnp.allclose(out, ref, atol=1e-5, rtol=1e-5), "mismatch vs reference"

    print("KERNEL_OK")
</pallas_src>

<mosaic_0001>
module attributes {stable_mosaic.version = 11 : i64} {
  func.func @_atom_encoder_kernel(%arg0: i32, %arg1: memref<256x4xi32, #tpu.memory_space<vmem>>, %arg2: memref<4x128x128xf32, #tpu.memory_space<vmem>>, %arg3: memref<256x128xf32, #tpu.memory_space<vmem>>) attributes {dimension_semantics = [#tpu.dimension_semantics<parallel>], iteration_bounds = array<i64: 4>, scalar_prefetch = 0 : i64, scratch_operands = 0 : i64, tpu.core_type = #tpu.core_type<tc>, window_params = [{transform_indices = @transform_0, window_bounds = array<i64: 256, 4>}, {pipeline_mode = #tpu.pipeline_mode<synchronous>, transform_indices = @transform_1, window_bounds = array<i64: 4, 128, 128>}, {transform_indices = @transform_2, window_bounds = array<i64: 256, 128>}]} {
    %c0 = arith.constant 0 : index
    %c0_0 = arith.constant 0 : index
    %0 = vector.load %arg1[%c0, %c0_0] : memref<256x4xi32, #tpu.memory_space<vmem>>, vector<256x4xi32>
    %1 = tpu.iota {dimensions = array<i32: 1>} : vector<256x128xi32>
    %cst = arith.constant 0.000000e+00 : f32
    %2 = vector.broadcast %cst : f32 to vector<256x128xf32>
    %3 = vector.extract_strided_slice %0 {offsets = [0, 0], sizes = [256, 1], strides = [1, 1]} : vector<256x4xi32> to vector<256x1xi32>
    %4 = vector.broadcast %3 : vector<256x1xi32> to vector<256x128xi32>
    %5 = arith.cmpi eq, %1, %4 : vector<256x128xi32>
    %6 = arith.extui %5 : vector<256x128xi1> to vector<256x128xi32>
    %7 = arith.sitofp %6 : vector<256x128xi32> to vector<256x128xf32>
    %c0_1 = arith.constant 0 : index
    %c0_2 = arith.constant 0 : index
    %c0_3 = arith.constant 0 : index
    %8 = vector.load %arg2[%c0_1, %c0_2, %c0_3] : memref<4x128x128xf32, #tpu.memory_space<vmem>>, vector<1x128x128xf32>
    %9 = vector.shape_cast %8 : vector<1x128x128xf32> to vector<128x128xf32>
    %cst_4 = arith.constant dense<0.000000e+00> : vector<256x128xf32>
    %10 = tpu.matmul %7, %9, %cst_4 {dimension_numbers = #tpu.dot_dimension_numbers<[1], [0], [0], [1], [0, 0, 1, 1], [], []>} : vector<256x128xf32>, vector<128x128xf32>, vector<256x128xf32> -> vector<256x128xf32>
    %11 = arith.addf %2, %10 : vector<256x128xf32>
    %12 = vector.extract_strided_slice %0 {offsets = [0, 1], sizes = [256, 1], strides = [1, 1]} : vector<256x4xi32> to vector<256x1xi32>
    %13 = vector.broadcast %12 : vector<256x1xi32> to vector<256x128xi32>
    %14 = arith.cmpi eq, %1, %13 : vector<256x128xi32>
    %15 = arith.extui %14 : vector<256x128xi1> to vector<256x128xi32>
    %16 = arith.sitofp %15 : vector<256x128xi32> to vector<256x128xf32>
    %c1 = arith.constant 1 : index
    %c0_5 = arith.constant 0 : index
    %c0_6 = arith.constant 0 : index
    %17 = vector.load %arg2[%c1, %c0_5, %c0_6] : memref<4x128x128xf32, #tpu.memory_space<vmem>>, vector<1x128x128xf32>
    %18 = vector.shape_cast %17 : vector<1x128x128xf32> to vector<128x128xf32>
    %cst_7 = arith.constant dense<0.000000e+00> : vector<256x128xf32>
    %19 = tpu.matmul %16, %18, %cst_7 {dimension_numbers = #tpu.dot_dimension_numbers<[1], [0], [0], [1], [0, 0, 1, 1], [], []>} : vector<256x128xf32>, vector<128x128xf32>, vector<256x128xf32> -> vector<256x128xf32>
    %20 = arith.addf %11, %19 : vector<256x128xf32>
    %21 = vector.extract_strided_slice %0 {offsets = [0, 2], sizes = [256, 1], strides = [1, 1]} : vector<256x4xi32> to vector<256x1xi32>
    %22 = vector.broadcast %21 : vector<256x1xi32> to vector<256x128xi32>
    %23 = arith.cmpi eq, %1, %22 : vector<256x128xi32>
    %24 = arith.extui %23 : vector<256x128xi1> to vector<256x128xi32>
    %25 = arith.sitofp %24 : vector<256x128xi32> to vector<256x128xf32>
    %c2 = arith.constant 2 : index
    %c0_8 = arith.constant 0 : index
    %c0_9 = arith.constant 0 : index
    %26 = vector.load %arg2[%c2, %c0_8, %c0_9] : memref<4x128x128xf32, #tpu.memory_space<vmem>>, vector<1x128x128xf32>
    %27 = vector.shape_cast %26 : vector<1x128x128xf32> to vector<128x128xf32>
    %cst_10 = arith.constant dense<0.000000e+00> : vector<256x128xf32>
    %28 = tpu.matmul %25, %27, %cst_10 {dimension_numbers = #tpu.dot_dimension_numbers<[1], [0], [0], [1], [0, 0, 1, 1], [], []>} : vector<256x128xf32>, vector<128x128xf32>, vector<256x128xf32> -> vector<256x128xf32>
    %29 = arith.addf %20, %28 : vector<256x128xf32>
    %30 = vector.extract_strided_slice %0 {offsets = [0, 3], sizes = [256, 1], strides = [1, 1]} : vector<256x4xi32> to vector<256x1xi32>
    %31 = vector.broadcast %30 : vector<256x1xi32> to vector<256x128xi32>
    %32 = arith.cmpi eq, %1, %31 : vector<256x128xi32>
    %33 = arith.extui %32 : vector<256x128xi1> to vector<256x128xi32>
    %34 = arith.sitofp %33 : vector<256x128xi32> to vector<256x128xf32>
    %c3 = arith.constant 3 : index
    %c0_11 = arith.constant 0 : index
    %c0_12 = arith.constant 0 : index
    %35 = vector.load %arg2[%c3, %c0_11, %c0_12] : memref<4x128x128xf32, #tpu.memory_space<vmem>>, vector<1x128x128xf32>
    %36 = vector.shape_cast %35 : vector<1x128x128xf32> to vector<128x128xf32>
    %cst_13 = arith.constant dense<0.000000e+00> : vector<256x128xf32>
    %37 = tpu.matmul %34, %36, %cst_13 {dimension_numbers = #tpu.dot_dimension_numbers<[1], [0], [0], [1], [0, 0, 1, 1], [], []>} : vector<256x128xf32>, vector<128x128xf32>, vector<256x128xf32> -> vector<256x128xf32>
    %38 = arith.addf %29, %37 : vector<256x128xf32>
    %c0_14 = arith.constant 0 : index
    %c0_15 = arith.constant 0 : index
    %39 = vector.load %arg3[%c0_14, %c0_15] : memref<256x128xf32, #tpu.memory_space<vmem>>, vector<256x128xf32>
    tpu.vector_store %arg3[%c0_14, %c0_15], %38 {strides = array<i32>} : memref<256x128xf32, #tpu.memory_space<vmem>>, vector<256x128xf32>,
    return
  }
  func.func @transform_0(%arg0: i32) -> (i32, i32) {
    %c0_i32 = arith.constant 0 : i32
    %c0_i32_0 = arith.constant 0 : i32
    return %arg0, %c0_i32 : i32, i32
  }
  func.func @transform_1(%arg0: i32) -> (i32, i32, i32) {
    %c0_i32 = arith.constant 0 : i32
    %c0_i32_0 = arith.constant 0 : i32
    %c0_i32_1 = arith.constant 0 : i32
    %c0_i32_2 = arith.constant 0 : i32
    return %c0_i32, %c0_i32_0, %c0_i32_1 : i32, i32, i32
  }
  func.func @transform_2(%arg0: i32) -> (i32, i32) {
    %c0_i32 = arith.constant 0 : i32
    %c0_i32_0 = arith.constant 0 : i32
    return %arg0, %c0_i32 : i32, i32
  }
}

</mosaic_0001>

<bundles_post_ra>
// kernel: tpu_custom_call.1
= control target key start
LH: loop header
LB: loop body
LE: loop exit
PB: predicated region body
PF: predicated region fallthrough
CT: control target
= control target key end

     0   :  { %7 = vsyncpa [#allocation3], 0  ;;  %s4164_s0 = inlined_call_operand.vmem [shape: s32[1024,4], index: 0, kind: input, shape index: {}]   ;;  %s4165_s1 = inlined_call_operand.vmem [shape: f32[4,128,128], index: 1, kind: input, shape index: {}]   ;;  %s4166_s2 = inlined_call_operand.hbm [shape: f32[1024,128], index: 2, kind: output, shape index: {}]  }
   0x1   :  { %9 = vsyncpa [#allocation3 + $0x1], 0  ;;  %s3094_s9 = smov 0   ;;  %s3096_s10 = smov 0  }
   0x2   :  { %s3098_s11 = smov 0   ;;  %s3100_s12 = smov 0  }
   0x3 LB: > { %s3115_s13 = sadd.s32 4294967295, %s3069_s12   ;;  %s2086_s14 = sadd.s32 4294967294, %s3069_s12   ;;  %s3069_s12 = sphi %s3100_s12, %s4172_s12   ;;  %s3065_s11 = sphi %s3098_s11, %s4171_s11   ;;  %s3061_s10 = sphi %s3096_s10, %s4170_s10   ;;  %s3057_s9 = sphi %s3094_s9, %s4169_s9  }
   0x4   : > { %s3119_s15 = sadd.s32 1, %s3069_s12   ;;  %s69_s16 = sadd.s32 1, %s3065_s11 }
   0x5   : > { %s66_s17 = ssub.s32 %s3069_s12, %s3119_s15  ;;  %p79_p0 = scmp.ne.s32.totalorder %s3065_s11, %s3061_s10 }
   0x6   : > { %p67_p1 = scmp.eq.s32.totalorder %s66_s17, 0  ;;  %p80_p2 = scmp.eq.s32.totalorder %s3115_s13, 3 }
   0x7   : > { %p85_p3 = scmp.ne.s32.totalorder %s3061_s10, %s3057_s9  ;;  %p86_p4 = scmp.eq.s32.totalorder %s2086_s14, 3 }
   0x8   : > { %s3130_s18 = scalar_select %p67_p1, %s3065_s11, %s69_s16  }
   0x9   : > { %p3132_p5 = por %p80_p2, %p79_p0  ;;  %p3136_p6 = por %p86_p4, %p85_p3 }
   0xa   : > { %p2089_p7 = scmp.ge.s32.totalorder %s3069_s12, 1  ;;  %p116_p8 = scmp.lt.s32.totalorder %s3069_s12, 5 }
   0xc   : > { %p117_p9 = pnand %p2089_p7, %p116_p8 }
   0xd   : > { %s2091_s21 = sshll.u32 (!%p117_p9), %s3115_s13, 5  ;;  %s2402_s30 = sshll.u32 (!%p117_p9), %s3115_s13, 12 }
   0xe   : > { %120 = sbr.rel (%p117_p9) target bundleno = 685 (0x2ad), region = 28  ;;  %p139_p10 = scmp.lt.s32.totalorder (!%p117_p9), %s2091_s21, 127 }
   0xf   : > { %s4116_s6 = scalar_lea.hbm (!%p117_p9), %s4166_s2, %s2402_s30  ;;  %s3076_s8 = smov (!%p117_p9), [#allocation2]  }
  0x10   : > { %s3013_s14 = sshll.u32 (!%p117_p9), %s3076_s8, 4  ;;  %s3014_s14 = int_to_ptr.vmem [resolvable:$false] %s3013_s14 }
  0x11   : > { %s3015_s16 = scalar_lea.vmem (!%p117_p9), %s3014_s14, 8192 }
  0x13   : > { %v3071_v0 = vmov 1   ;;  %v3072_v1 = vmov 0   ;;  %s4174_s21 = smov (!%p139_p10, %s2091_s21), 127  ;;  %v2172_v18 = vld [vmem:[%s4165_s1 + $0xf8] sm:$0xff]  ;;  %v2171_v22 = vld [vmem:[%s4165_s1 + $0xf0] sm:$0xff]  ;;  %v2170_v24 = vld [vmem:[%s4165_s1 + $0xe8] sm:$0xff] }
  0x14   : > { %2963 = vset.pattern.permute.xlu0 %v3071_v0  ;;  %2961 = vset.pattern.permute.xlu1 %v3072_v1  ;;  %s2092_s22 = sshll.u32 %s4174_s21, 3  ;;  %v386_v21 = vld [vmem:[%s4165_s1 + $0x78] sm:$0xff]  ;;  %v385_v23 = vld [vmem:[%s4165_s1 + $0x70] sm:$0xff]  ;;  %v384_v25 = vld [vmem:[%s4165_s1 + $0x68] sm:$0xff] }
  0x15   : > { %s3148_s25 = scalar_lea.vmem %s4164_s0, %s2092_s22  ;;  %2595 = vmatprep.subr.mxu0 %v2172_v18  ;;  %2675 = vmatprep.subr.mxu1 %v386_v21  ;;  %v2169_v28 = vld [vmem:[%s4165_s1 + $0xe0] sm:$0xff]  ;;  %v2168_v30 = vld [vmem:[%s4165_s1 + $0xd8] sm:$0xff]  ;;  %v2167_v34 = vld [vmem:[%s4165_s1 + $0xd0] sm:$0xff] }
  0x16   : > { %v3151_v2 = vld [vmem:[%s3148_s25 + $0x10] sm:$0xff]  ;;  %v3154_v3 = vld [vmem:[%s3148_s25 + $0x8] sm:$0xff]  ;;  %v3159_v4 = vld [vmem:[%s3148_s25 + $0x18] sm:$0xff]  ;;  %2596 = vmatpush3.msra.mxu0 %v2172_v18  ;;  %2676 = vmatpush3.msra.mxu1 %v386_v21 }
  0x17   : > { %186 = vperm.xlu1 %2961, %v3151_v2   ;;  %391 = vperm.xlu0 %2963, %v3154_v3   ;;  %v3162_v5 = vld [vmem:[%s3148_s25 + $0x20] sm:$0xff]  ;;  %v3167_v6 = vld [vmem:[%s3148_s25 + $0x28] sm:$0xff]  ;;  %v3170_v7 = vld [vmem:[%s3148_s25 + $0x30] sm:$0xff] }
  0x18   : > { %v3175_v8 = vld [vmem:[%s3148_s25 + $0x38] sm:$0xff]  ;;  %v3178_v9 = vld [vmem:[%s3148_s25 + $0x40] sm:$0xff]  ;;  %v3183_v10 = vld [vmem:[%s3148_s25 + $0x48] sm:$0xff]  ;;  %2597 = vmatprep.subr.mxu0 %v2171_v22  ;;  %2677 = vmatprep.subr.mxu1 %v385_v23 }
  0x19   : > { %v3186_v11 = vld [vmem:[%s3148_s25 + $0x50] sm:$0xff]  ;;  %v3191_v12 = vld [vmem:[%s3148_s25 + $0x58] sm:$0xff]  ;;  %v3194_v13 = vld [vmem:[%s3148_s25 + $0x60] sm:$0xff]  ;;  %2598 = vmatpush3.msra.mxu0 %v2171_v22  ;;  %2678 = vmatpush3.msra.mxu1 %v385_v23 }
  0x1a   : > { %v3199_v14 = vld [vmem:[%s3148_s25 + $0x68] sm:$0xff]  ;;  %v3202_v15 = vld [vmem:[%s3148_s25 + $0x70] sm:$0xff]  ;;  %v3207_v16 = vld [vmem:[%s3148_s25 + $0x78] sm:$0xff]  ;;  %2599 = vmatprep.subr.mxu0 %v2170_v24  ;;  %2679 = vmatprep.subr.mxu1 %v384_v25 }
  0x1b   : > { %189 = vperm.xlu1 %2961, %v3159_v4   ;;  %400 = vperm.xlu0 %2963, %v3162_v5   ;;  %v3210_v17 = vld [vmem:[%s3148_s25 + $0x80] sm:$0xff]  ;;  %v3218_v19 = vld [vmem:[%s3148_s25 + $0x88] sm:$0xff]  ;;  %v3221_v20 = vld [vmem:[%s3148_s25 + $0x90] sm:$0xff] }
  0x1c   : > { %v3241_v26 = vld [vmem:[%s3148_s25 + $0x98] sm:$0xff]  ;;  %v3244_v27 = vld [vmem:[%s3148_s25 + $0xa0] sm:$0xff]  ;;  %2600 = vmatpush3.msra.mxu0 %v2170_v24  ;;  %v3258_v31 = vld [vmem:[%s3148_s25 + $0xa8] sm:$0xff]  ;;  %2680 = vmatpush3.msra.mxu1 %v384_v25 }
  0x1d   : > { %v383_v29 = vld [vmem:[%s4165_s1 + $0x60] sm:$0xff]  ;;  %v3261_v32 = vld [vmem:[%s3148_s25 + $0xb0] sm:$0xff]  ;;  %2601 = vmatprep.subr.mxu0 %v2169_v28  ;;  %v382_v33 = vld [vmem:[%s4165_s1 + $0x58] sm:$0xff] }
  0x1e   : > { %2602 = vmatpush3.msra.mxu0 %v2169_v28  ;;  %2681 = vmatprep.subr.mxu1 %v383_v29  ;;  %v381_v35 = vld [vmem:[%s4165_s1 + $0x50] sm:$0xff]  ;;  %v3275_v36 = vld [vmem:[%s3148_s25 + $0xb8] sm:$0xff]  ;;  %v3278_v37 = vld [vmem:[%s3148_s25 + $0xc0] sm:$0xff]  ;;  %v3073_v28 = vmov 3  }
  0x1f   : > { %195 = vperm.xlu1 %2961, %v3167_v6   ;;  %406 = vperm.xlu0 %2963, %v3170_v7   ;;  %v2166_v38 = vld [vmem:[%s4165_s1 + $0xc8] sm:$0xff]  ;;  %v2165_v40 = vld [vmem:[%s4165_s1 + $0xc0] sm:$0xff]  ;;  %v3295_v42 = vld [vmem:[%s3148_s25 + $0xd0] sm:$0xff] }
  0x20   : > { %2603 = vmatprep.subr.mxu0 %v2168_v30  ;;  %2682 = vmatpush3.msra.mxu1 %v383_v29  ;;  %v380_v39 = vld [vmem:[%s4165_s1 + $0x48] sm:$0xff]  ;;  %v379_v43 = vld [vmem:[%s4165_s1 + $0x40] sm:$0xff]  ;;  %v2164_v44 = vld [vmem:[%s4165_s1 + $0xb8] sm:$0xff]  ;;  %v3074_v29 = vmov 2  }
  0x21   : > { %2604 = vmatpush3.msra.mxu0 %v2168_v30  ;;  %2683 = vmatprep.subr.mxu1 %v382_v33  ;;  %v3292_v41 = vld [vmem:[%s3148_s25 + $0xc8] sm:$0xff]  ;;  %v378_v45 = vld [vmem:[%s4165_s1 + $0x38] sm:$0xff]  ;;  %v3312_v47 = vld [vmem:[%s3148_s25 + $0xe0] sm:$0xff] }
  0x22   : > { %2605 = vmatprep.subr.mxu0 %v2167_v34  ;;  %2684 = vmatpush3.msra.mxu1 %v382_v33  ;;  %v3309_v46 = vld [vmem:[%s3148_s25 + $0xd8] sm:$0xff]  ;;  %v2163_v48 = vld [vmem:[%s4165_s1 + $0xb0] sm:$0xff]  ;;  %v2162_v50 = vld [vmem:[%s4165_s1 + $0xa8] sm:$0xff] }
  0x23   : > { %201 = vperm.xlu1 %2961, %v3175_v8   ;;  %412 = vperm.xlu0 %2963, %v3178_v9   ;;  %v377_v49 = vld [vmem:[%s4165_s1 + $0x30] sm:$0xff]  ;;  %v3326_v51 = vld [vmem:[%s3148_s25 + $0xe8] sm:$0xff]  ;;  %v2161_v54 = vld [vmem:[%s4165_s1 + $0xa0] sm:$0xff] }
  0x24   : > { %2606 = vmatpush3.msra.mxu0 %v2167_v34  ;;  %2685 = vmatprep.subr.mxu1 %v381_v35  ;;  %v3329_v52 = vld [vmem:[%s3148_s25 + $0xf0] sm:$0xff]  ;;  %v376_v53 = vld [vmem:[%s4165_s1 + $0x28] sm:$0xff]  ;;  %v375_v55 = vld [vmem:[%s4165_s1 + $0x20] sm:$0xff] }
  0x25   : > { %2607 = vmatprep.subr.mxu0 %v2166_v38  ;;  %2686 = vmatpush3.msra.mxu1 %v381_v35  ;;  %v3343_v56 = vld [vmem:[%s3148_s25] sm:$0xff]  ;;  %v2160_v57 = vld [vmem:[%s4165_s1 + $0x98] sm:$0xff]  ;;  %v2159_v59 = vld [vmem:[%s4165_s1 + $0x90] sm:$0xff] }
  0x26   : > { %2608 = vmatpush3.msra.mxu0 %v2166_v38  ;;  %2687 = vmatprep.subr.mxu1 %v380_v39  ;;  %v374_v58 = vld [vmem:[%s4165_s1 + $0x18] sm:$0xff]  ;;  %v373_v60 = vld [vmem:[%s4165_s1 + $0x10] sm:$0xff]  ;;  %v2158_v61 = vld [vmem:[%s4165_s1 + $0x88] sm:$0xff] }
  0x27   : > { %207 = vperm.xlu1 %2961, %v3183_v10   ;;  %418 = vperm.xlu0 %2963, %v3186_v11   ;;  %v372_v62 = vld [vmem:[%s4165_s1 + $0x8] sm:$0xff]  ;;  %v2157_v63 = vld [vmem:[%s4165_s1 + $0x80] sm:$0xff]  ;;  %v3402_v18 = vld [vmem:[%s4165_s1 + $0x1f8] sm:$0xff] }
  0x28   : > { %2609 = vmatprep.subr.mxu0 %v2165_v40  ;;  %2688 = vmatpush3.msra.mxu1 %v380_v39  ;;  %v3416_v21 = vld [vmem:[%s3148_s25 + $0xf8] sm:$0xff] }
  0x29   : > { %2610 = vmatpush3.msra.mxu0 %v2165_v40  ;;  %2689 = vmatprep.subr.mxu1 %v379_v43 }
  0x2a   : > { %2611 = vmatprep.subr.mxu0 %v2164_v44  ;;  %2690 = vmatpush3.msra.mxu1 %v379_v43 }
  0x2b   : > { %213 = vperm.xlu1 %2961, %v3191_v12   ;;  %424 = vperm.xlu0 %2963, %v3194_v13  }
  0x2c   : > { %2612 = vmatpush3.msra.mxu0 %v2164_v44  ;;  %2691 = vmatprep.subr.mxu1 %v378_v45 }
  0x2d   : > { %2613 = vmatprep.subr.mxu0 %v2163_v48  ;;  %2692 = vmatpush3.msra.mxu1 %v378_v45 }
  0x2e   : > { %2614 = vmatpush3.msra.mxu0 %v2163_v48  ;;  %2693 = vmatprep.subr.mxu1 %v377_v49 }
  0x2f   : > { %219 = vperm.xlu1 %2961, %v3199_v14   ;;  %430 = vperm.xlu0 %2963, %v3202_v15  }
  0x30   : > { %2615 = vmatprep.subr.mxu0 %v2162_v50  ;;  %2694 = vmatpush3.msra.mxu1 %v377_v49 }
  0x31   : > { %2616 = vmatpush3.msra.mxu0 %v2162_v50  ;;  %2695 = vmatprep.subr.mxu1 %v376_v53 }
  0x32   : > { %2617 = vmatprep.subr.mxu0 %v2161_v54  ;;  %2696 = vmatpush3.msra.mxu1 %v376_v53 }
  0x33   : > { %225 = vperm.xlu1 %2961, %v3207_v16   ;;  %436 = vperm.xlu0 %2963, %v3210_v17  }
  0x34   : > { %2618 = vmatpush3.msra.mxu0 %v2161_v54  ;;  %2697 = vmatprep.subr.mxu1 %v375_v55 }
  0x35   : > { %2619 = vmatprep.subr.mxu0 %v2160_v57  ;;  %2698 = vmatpush3.msra.mxu1 %v375_v55 }
  0x36   : > { %2620 = vmatpush3.msra.mxu0 %v2160_v57  ;;  %2699 = vmatprep.subr.mxu1 %v374_v58  ;;  %v2283_v57 = vld [vmem:[%s4165_s1 + $0x170] sm:$0xff] }
  0x37   : > { %231 = vperm.xlu1 %2961, %v3218_v19   ;;  %442 = vperm.xlu0 %2963, %v3221_v20  }
  0x38   : > { %2621 = vmatprep.subr.mxu0 %v2159_v59  ;;  %2700 = vmatpush3.msra.mxu1 %v374_v58 }
  0x39   : > { %2622 = vmatpush3.msra.mxu0 %v2159_v59  ;;  %2701 = vmatprep.subr.mxu1 %v373_v60 }
  0x3a   : > { %2623 = vmatprep.subr.mxu0 %v2158_v61  ;;  %2702 = vmatpush3.msra.mxu1 %v373_v60 }
  0x3b   : > { %237 = vperm.xlu1 %2961, %v3241_v26   ;;  %448 = vperm.xlu0 %2963, %v3244_v27  }
  0x3c   : > { %2624 = vmatpush3.msra.mxu0 %v2158_v61  ;;  %2703 = vmatprep.subr.mxu1 %v372_v62  ;;  %v2281_v61 = vld [vmem:[%s4165_s1 + $0x160] sm:$0xff] }
  0x3d   : > { %2625 = vmatprep.subr.mxu0 %v2157_v63  ;;  %2704 = vmatpush3.msra.mxu1 %v372_v62 }
  0x3e   : > { %2626 = vmatpush3.msra.mxu0 %v2157_v63 }
  0x3f   : > { %243 = vperm.xlu1 %2961, %v3258_v31   ;;  %454 = vperm.xlu0 %2963, %v3261_v32  }
  0x43   : > { %249 = vperm.xlu1 %2961, %v3275_v36   ;;  %460 = vperm.xlu0 %2963, %v3278_v37  }
  0x47   : > { %255 = vperm.xlu1 %2961, %v3292_v41   ;;  %466 = vperm.xlu0 %2963, %v3295_v42  }
  0x4b   : > { %261 = vperm.xlu1 %2961, %v3309_v46   ;;  %472 = vperm.xlu0 %2963, %v3312_v47  }
  0x4f   : > { %267 = vperm.xlu1 %2961, %v3326_v51   ;;  %478 = vperm.xlu0 %2963, %v3329_v52  }
  0x53   : > { %2962 = vset.pattern.permute.xlu1 %v3071_v0  ;;  %2964 = vset.pattern.permute.xlu0 %v3072_v1  ;;  %v371_v0 = vld [vmem:[%s4165_s1] sm:$0xff]  ;;  %v3394_v1 = vld [vmem:[%s4165_s1 + $0x178] sm:$0xff] }
  0x54   : > { %180 = vperm.xlu0 %2964, %v3343_v56   ;;  %388 = vperm.xlu1 %2962, %v3343_v56  }
  0x55   : > { %2705 = vmatprep.subr.mxu1 %v371_v0  ;;  %2755 = vmatprep.subr.mxu0 %v3394_v1 }
  0x56   : > { %2706 = vmatpush3.msra.mxu1 %v371_v0  ;;  %v2363_v0 = vld [vmem:[%s4165_s1 + $0x1f0] sm:$0xff] }
  0x57   : > { %2835 = vmatprep.subr.mxu1 %v3402_v18 }
  0x58   : > { %183 = vperm.xlu0 %2964, %v3154_v3   ;;  %394 = vperm.xlu1 %2962, %v3151_v2  }
  0x5c   : > { %192 = vperm.xlu0 %2964, %v3162_v5   ;;  %397 = vperm.xlu1 %2962, %v3159_v4  }
  0x60   : > { %198 = vperm.xlu0 %2964, %v3170_v7   ;;  %403 = vperm.xlu1 %2962, %v3167_v6  }
  0x64   : > { %204 = vperm.xlu0 %2964, %v3178_v9   ;;  %409 = vperm.xlu1 %2962, %v3175_v8  }
  0x68   : > { %210 = vperm.xlu0 %2964, %v3186_v11   ;;  %415 = vperm.xlu1 %2962, %v3183_v10  }
  0x6c   : > { %216 = vperm.xlu0 %2964, %v3194_v13   ;;  %421 = vperm.xlu1 %2962, %v3191_v12  }
  0x70   : > { %222 = vperm.xlu0 %2964, %v3202_v15   ;;  %427 = vperm.xlu1 %2962, %v3199_v14  }
  0x74   : > { %228 = vperm.xlu0 %2964, %v3210_v17   ;;  %433 = vperm.xlu1 %2962, %v3207_v16  }
  0x78   : > { %234 = vperm.xlu0 %2964, %v3221_v20   ;;  %439 = vperm.xlu1 %2962, %v3218_v19  }
  0x7c   : > { %240 = vperm.xlu0 %2964, %v3244_v27   ;;  %445 = vperm.xlu1 %2962, %v3241_v26  }
  0x80   : > { %246 = vperm.xlu0 %2964, %v3261_v32   ;;  %451 = vperm.xlu1 %2962, %v3258_v31  }
  0x84   : > { %252 = vperm.xlu0 %2964, %v3278_v37   ;;  %457 = vperm.xlu1 %2962, %v3275_v36  }
  0x88   : > { %258 = vperm.xlu0 %2964, %v3295_v42   ;;  %463 = vperm.xlu1 %2962, %v3292_v41  }
  0x8c   : > { %264 = vperm.xlu0 %2964, %v3312_v47   ;;  %469 = vperm.xlu1 %2962, %v3309_v46  }
  0x90   : > { %270 = vperm.xlu0 %2964, %v3329_v52   ;;  %475 = vperm.xlu1 %2962, %v3326_v51  }
  0x92   : > { %v3418_v22 = vpop.permute.xlu1 %186  ;;  %v3420_v23 = vpop.permute.xlu0 %391 }
  0x94   : > { %273 = vperm.xlu0 %2964, %v3416_v21   ;;  %481 = vperm.xlu1 %2962, %v3416_v21  }
  0x96   : > { %v3424_v24 = vpop.permute.xlu1 %189  ;;  %v3426_v25 = vpop.permute.xlu0 %400 }
  0x98   : > { %2966 = vset.pattern.permute.xlu0 %v3073_v28  ;;  %2965 = vset.pattern.permute.xlu1 %v3074_v29 }
  0x99   : > { %1513 = vperm.xlu0 %2966, %v3343_v56   ;;  %1047 = vperm.xlu1 %2965, %v3343_v56  }
  0x9a   : > { %v3432_v30 = vpop.permute.xlu1 %195  ;;  %v3434_v32 = vpop.permute.xlu0 %406 }
  0x9d   : > { %1525 = vperm.xlu0 %2966, %v3162_v5   ;;  %1050 = vperm.xlu1 %2965, %v3154_v3  }
  0x9e   : > { %v3438_v33 = vpop.permute.xlu1 %201  ;;  %v3440_v34 = vpop.permute.xlu0 %412 }
  0xa1   : > { %1537 = vperm.xlu0 %2966, %v3178_v9   ;;  %2967 = vset.pattern.permute.xlu1 %v3073_v28 }
  0xa2   : > { %v3444_v35 = vpop.permute.xlu1 %207  ;;  %1516 = vperm.xlu1 %2967, %v3154_v3   ;;  %v3447_v38 = vpop.permute.xlu0 %418 }
  0xa5   : > { %1549 = vperm.xlu0 %2966, %v3194_v13  }
  0xa6   : > { %v3450_v39 = vpop.permute.xlu1 %213  ;;  %2968 = vset.pattern.permute.xlu1 %v3074_v29  ;;  %v3453_v40 = vpop.permute.xlu0 %424 }
  0xa7   : > { %1053 = vperm.xlu1 %2968, %v3151_v2  }
  0xa9   : > { %1561 = vperm.xlu0 %2966, %v3210_v17  }
  0xaa   : > { %v3457_v41 = vpop.permute.xlu1 %219  ;;  %v3459_v42 = vpop.permute.xlu0 %430 }
  0xab   : > { %2969 = vset.pattern.permute.xlu1 %v3073_v28 }
  0xac   : > { %1519 = vperm.xlu1 %2969, %v3151_v2  }
  0xad   : > { %1573 = vperm.xlu0 %2966, %v3244_v27  }
  0xae   : > { %v3464_v3 = vpop.permute.xlu1 %225  ;;  %v3466_v43 = vpop.permute.xlu0 %436 }
  0xb0   : > { %1522 = vperm.xlu1 %2969, %v3159_v4  }
  0xb1   : > { %2987 = vset.pattern.permute.xlu0 %v3074_v29 }
  0xb2   : > { %v3470_v44 = vpop.permute.xlu1 %231  ;;  %1056 = vperm.xlu0 %2987, %v3159_v4   ;;  %v3473_v45 = vpop.permute.xlu0 %442 }
  0xb4   : > { %2970 = vset.pattern.permute.xlu1 %v3074_v29 }
  0xb5   : > { %1062 = vperm.xlu1 %2970, %v3167_v6  }
  0xb6   : > { %v3477_v2 = vpop.permute.xlu1 %237  ;;  %1059 = vperm.xlu0 %2987, %v3162_v5   ;;  %v3480_v48 = vpop.permute.xlu0 %448 }
  0xb9   : > { %2971 = vset.pattern.permute.xlu1 %v3073_v28 }
  0xba   : > { %v3483_v49 = vpop.permute.xlu1 %243  ;;  %1528 = vperm.xlu1 %2971, %v3167_v6   ;;  %v3486_v50 = vpop.permute.xlu0 %454  ;;  %1068 = vperm.xlu0 %2987, %v3175_v8  }
  0xbe   : > { %v3489_v4 = vpop.permute.xlu1 %249  ;;  %2972 = vset.pattern.permute.xlu1 %v3074_v29  ;;  %v3492_v51 = vpop.permute.xlu0 %460  ;;  %1071 = vperm.xlu0 %2987, %v3178_v9   ;;  %v177_v9 = vlaneseq }
  0xbf   : > { %1065 = vperm.xlu1 %2972, %v3170_v7  }
  0xc0   : > { %v3515_v56 = vand.u32 127, %v177_v9  ;;  %v2273_v9 = vld [vmem:[%s4165_s1 + $0x120] sm:$0xff] }
  0xc2   : > { %v3496_v5 = vpop.permute.xlu1 %255  ;;  %v3498_v52 = vpop.permute.xlu0 %466  ;;  %1080 = vperm.xlu0 %2987, %v3191_v12   ;;  %vm484_vm0 = vcmp.eq.s32.totalorder %v3515_v56, %v3420_v23  ;;  %vm277_vm5 = vcmp.eq.s32.totalorder %v3515_v56, %v3418_v22  ;;  %vm487_vm6 = vcmp.eq.s32.totalorder %v3515_v56, %v3426_v25  ;;  %vm278_vm7 = vcmp.eq.s32.totalorder %v3515_v56, %v3424_v24  ;;  %v2362_v22 = vld [vmem:[%s4165_s1 + $0x1e8] sm:$0xff]  ;;  %v2279_v23 = vld [vmem:[%s4165_s1 + $0x150] sm:$0xff] }
  0xc3   : > { %2973 = vset.pattern.permute.xlu1 %v3073_v28  ;;  %vm489_vm10 = vcmp.eq.s32.totalorder %v3515_v56, %v3434_v32  ;;  %vm280_vm11 = vcmp.eq.s32.totalorder %v3515_v56, %v3432_v30  ;;  %vm491_vm14 = vcmp.eq.s32.totalorder %v3515_v56, %v3440_v34  ;;  %vm282_vm15 = vcmp.eq.s32.totalorder %v3515_v56, %v3438_v33  ;;  %v2361_v30 = vld [vmem:[%s4165_s1 + $0x1e0] sm:$0xff] }
  0xc4   : > { %1531 = vperm.xlu1 %2973, %v3170_v7  }
  0xc6   : > { %v3503_v6 = vpop.permute.xlu1 %261  ;;  %v3505_v53 = vpop.permute.xlu0 %472  ;;  %1083 = vperm.xlu0 %2987, %v3194_v13   ;;  %v3075_v13 = vmov 1.0  }
  0xc8   : > { %1534 = vperm.xlu1 %2973, %v3175_v8  }
  0xca   : > { %v3509_v54 = vpop.permute.xlu1 %267  ;;  %v3511_v55 = vpop.permute.xlu0 %478  ;;  %1092 = vperm.xlu0 %2987, %v3207_v16  }
  0xcc   : > { %2974 = vset.pattern.permute.xlu1 %v3074_v29 }
  0xcd   : > { %1074 = vperm.xlu1 %2974, %v3183_v10  }
  0xce   : > { %1095 = vperm.xlu0 %2987, %v3210_v17  }
  0xcf   : > { %v181_v7 = vpop.permute.xlu0 %180  ;;  %v389_v8 = vpop.permute.xlu1 %388 }
  0xd0   : > { %vm483_vm1 = vcmp.eq.s32.totalorder %v3515_v56, %v389_v8  ;;  %vm275_vm2 = vcmp.eq.s32.totalorder %v3515_v56, %v181_v7  ;;  %v2354_v7 = vld [vmem:[%s4165_s1 + $0x1a8] sm:$0xff] }
  0xd1   : > { %2975 = vset.pattern.permute.xlu1 %v3073_v28  ;;  %2627 = vmatprep.mubr.msk.f32.mxu0 %vm483_vm1, %v3075_v13 }
  0xd2   : > { %1540 = vperm.xlu1 %2975, %v3183_v10   ;;  %2628 = vmatmul.mubr.msk.f32.vlgmr.msra.gmra.mxu0 %vm484_vm0, %v3075_v13  ;;  %v2282_v10 = vld [vmem:[%s4165_s1 + $0x168] sm:$0xff] }
  0xd3   : > { %v184_v17 = vpop.permute.xlu0 %183  ;;  %v395_v58 = vpop.permute.xlu1 %394  ;;  %2707 = vmatprep.mubr.msk.f32.mxu1 %vm275_vm2, %v3075_v13  ;;  %2756 = vmatpush3.msra.mxu0 %v3394_v1  ;;  %vm284_vm2 = vcmp.eq.s32.totalorder %v3515_v56, %v3444_v35 }
  0xd4   : > { %vm276_vm3 = vcmp.eq.s32.totalorder %v3515_v56, %v184_v17  ;;  %vm485_vm4 = vcmp.eq.s32.totalorder %v3515_v56, %v395_v58  ;;  %2757 = vmatprep.subr.mxu0 %v2283_v57  ;;  %1104 = vperm.xlu0 %2987, %v3241_v26   ;;  %v2353_v17 = vld [vmem:[%s4165_s1 + $0x1a0] sm:$0xff]  ;;  %v2270_v58 = vld [vmem:[%s4165_s1 + $0x108] sm:$0xff] }
  0xd5   : > { %2630 = vmatprep.mubr.msk.f32.mxu0 %vm485_vm4, %v3075_v13  ;;  %2708 = vmatmul.mubr.msk.f32.vlgmr.msra.gmra.mxu1 %vm276_vm3, %v3075_v13  ;;  %vm493_vm3 = vcmp.eq.s32.totalorder %v3515_v56, %v3447_v38 }
  0xd6   : > { %2710 = vmatprep.mubr.msk.f32.mxu1 %vm277_vm5, %v3075_v13  ;;  %2976 = vset.pattern.permute.xlu1 %v3074_v29 }
  0xd7   : > { %v193_v59 = vpop.permute.xlu0 %192  ;;  %1077 = vperm.xlu1 %2976, %v3186_v11   ;;  %v398_v60 = vpop.permute.xlu1 %397  ;;  %2758 = vmatpush3.msra.mxu0 %v2283_v57  ;;  %v2271_v57 = vld [vmem:[%s4165_s1 + $0x110] sm:$0xff] }
  0xd8   : > { %vm279_vm8 = vcmp.eq.s32.totalorder %v3515_v56, %v193_v59  ;;  %vm486_vm9 = vcmp.eq.s32.totalorder %v3515_v56, %v398_v60  ;;  %2759 = vmatprep.subr.mxu0 %v2282_v10  ;;  %2836 = vmatpush3.msra.mxu1 %v3402_v18  ;;  %v2352_v60 = vld [vmem:[%s4165_s1 + $0x198] sm:$0xff] }
  0xd9   : > { %2631 = vmatmul.mubr.msk.f32.gmra.mxu0 %vm486_vm9, %v3075_v13  ;;  %2711 = vmatmul.mubr.msk.f32.gmra.mxu1 %vm278_vm7, %v3075_v13  ;;  %vm495_vm7 = vcmp.eq.s32.totalorder %v3515_v56, %v3453_v40  ;;  %v2277_v40 = vld [vmem:[%s4165_s1 + $0x140] sm:$0xff] }
  0xda   : > { %2713 = vmatprep.mubr.msk.f32.mxu1 %vm279_vm8, %v3075_v13  ;;  %2633 = vmatprep.mubr.msk.f32.mxu0 %vm487_vm6, %v3075_v13  ;;  %vm286_vm6 = vcmp.eq.s32.totalorder %v3515_v56, %v3450_v39 }
  0xdb   : > { %v199_v62 = vpop.permute.xlu0 %198  ;;  %2977 = vset.pattern.permute.xlu1 %v3073_v28  ;;  %v404_v63 = vpop.permute.xlu1 %403  ;;  %2760 = vmatpush3.msra.mxu0 %v2282_v10 }
  0xdc   : > { %vm281_vm12 = vcmp.eq.s32.totalorder %v3515_v56, %v199_v62  ;;  %vm488_vm13 = vcmp.eq.s32.totalorder %v3515_v56, %v404_v63  ;;  %1543 = vperm.xlu1 %2977, %v3186_v11   ;;  %2761 = vmatprep.subr.mxu0 %v2281_v61  ;;  %v2280_v11 = vld [vmem:[%s4165_s1 + $0x158] sm:$0xff]  ;;  %v2351_v62 = vld [vmem:[%s4165_s1 + $0x190] sm:$0xff] }
  0xdd   : > { %2634 = vmatmul.mubr.msk.f32.gmra.mxu0 %vm488_vm13, %v3075_v13  ;;  %2714 = vmatmul.mubr.msk.f32.gmra.mxu1 %vm280_vm11, %v3075_v13  ;;  %vm497_vm11 = vcmp.eq.s32.totalorder %v3515_v56, %v3459_v42 }
  0xde   : > { %2716 = vmatprep.mubr.msk.f32.mxu1 %vm281_vm12, %v3075_v13  ;;  %2636 = vmatprep.mubr.msk.f32.mxu0 %vm489_vm10, %v3075_v13  ;;  %vm288_vm10 = vcmp.eq.s32.totalorder %v3515_v56, %v3457_v41 }
  0xdf   : > { %v205_v1 = vpop.permute.xlu0 %204  ;;  %v410_v18 = vpop.permute.xlu1 %409  ;;  %2837 = vmatprep.subr.mxu1 %v2363_v0  ;;  %2762 = vmatpush3.msra.mxu0 %v2281_v61  ;;  %v2269_v61 = vld [vmem:[%s4165_s1 + $0x100] sm:$0xff] }
  0xe0   : > { %vm283_vm0 = vcmp.eq.s32.totalorder %v3515_v56, %v205_v1  ;;  %vm490_vm1 = vcmp.eq.s32.totalorder %v3515_v56, %v410_v18  ;;  %1546 = vperm.xlu1 %2977, %v3191_v12   ;;  %1107 = vperm.xlu0 %2987, %v3244_v27   ;;  %v2349_v18 = vld [vmem:[%s4165_s1 + $0x180] sm:$0xff] }
  0xe1   : > { %2637 = vmatmul.mubr.msk.f32.gmra.mxu0 %vm490_vm1, %v3075_v13  ;;  %2717 = vmatmul.mubr.msk.f32.gmra.mxu1 %vm282_vm15, %v3075_v13  ;;  %vm499_vm15 = vcmp.eq.s32.totalorder %v3515_v56, %v3466_v43 }
  0xe2   : > { %2719 = vmatprep.mubr.msk.f32.mxu1 %vm283_vm0, %v3075_v13  ;;  %2639 = vmatprep.mubr.msk.f32.mxu0 %vm491_vm14, %v3075_v13  ;;  %vm290_vm14 = vcmp.eq.s32.totalorder %v3515_v56, %v3464_v3 }
  0xe3   : > { %v211_v12 = vpop.permute.xlu0 %210  ;;  %v416_v27 = vpop.permute.xlu1 %415  ;;  %2838 = vmatpush3.msra.mxu1 %v2363_v0  ;;  %2763 = vmatprep.subr.mxu0 %v2280_v11  ;;  %v2350_v0 = vld [vmem:[%s4165_s1 + $0x188] sm:$0xff] }
  0xe4   : > { %vm285_vm4 = vcmp.eq.s32.totalorder %v3515_v56, %v211_v12  ;;  %vm492_vm5 = vcmp.eq.s32.totalorder %v3515_v56, %v416_v27  ;;  %2978 = vset.pattern.permute.xlu1 %v3074_v29  ;;  %2839 = vmatprep.subr.mxu1 %v2362_v22 }
  0xe5   : > { %2720 = vmatmul.mubr.msk.f32.gmra.mxu1 %vm284_vm2, %v3075_v13  ;;  %1086 = vperm.xlu1 %2978, %v3199_v14   ;;  %vm292_vm2 = vcmp.eq.s32.totalorder %v3515_v56, %v3470_v44 }
  0xe6   : > { %2640 = vmatmul.mubr.msk.f32.gmra.mxu0 %vm492_vm5, %v3075_v13  ;;  %2722 = vmatprep.mubr.msk.f32.mxu1 %vm285_vm4, %v3075_v13  ;;  %vm501_vm5 = vcmp.eq.s32.totalorder %v3515_v56, %v3473_v45 }
  0xe7   : > { %v217_v24 = vpop.permute.xlu0 %216  ;;  %v422_v25 = vpop.permute.xlu1 %421  ;;  %2642 = vmatprep.mubr.msk.f32.mxu0 %vm493_vm3, %v3075_v13  ;;  %2764 = vmatpush3.msra.mxu0 %v2280_v11 }
  0xe8   : > { %vm287_vm8 = vcmp.eq.s32.totalorder %v3515_v56, %v217_v24  ;;  %vm494_vm9 = vcmp.eq.s32.totalorder %v3515_v56, %v422_v25  ;;  %2765 = vmatprep.subr.mxu0 %v2279_v23  ;;  %2840 = vmatpush3.msra.mxu1 %v2362_v22  ;;  %v3003_v25 = vld [vmem:[%s3148_s25 + $0xb8] sm:$0xff] }
  0xe9   : > { %2723 = vmatmul.mubr.msk.f32.gmra.mxu1 %vm286_vm6, %v3075_v13  ;;  %2979 = vset.pattern.permute.xlu1 %v3073_v28  ;;  %vm294_vm6 = vcmp.eq.s32.totalorder %v3515_v56, %v3477_v2  ;;  %v2358_v2 = vld [vmem:[%s4165_s1 + $0x1c8] sm:$0xff] }
  0xea   : > { %2643 = vmatmul.mubr.msk.f32.gmra.mxu0 %vm494_vm9, %v3075_v13  ;;  %1552 = vperm.xlu1 %2979, %v3199_v14   ;;  %v2278_v14 = vld [vmem:[%s4165_s1 + $0x148] sm:$0xff]  ;;  %vm503_vm9 = vcmp.eq.s32.totalorder %v3515_v56, %v3480_v48  ;;  %v2275_v48 = vld [vmem:[%s4165_s1 + $0x130] sm:$0xff] }
  0xeb   : > { %v223_v32 = vpop.permute.xlu0 %222  ;;  %v428_v33 = vpop.permute.xlu1 %427  ;;  %2645 = vmatprep.mubr.msk.f32.mxu0 %vm495_vm7, %v3075_v13  ;;  %2725 = vmatprep.mubr.msk.f32.mxu1 %vm287_vm8, %v3075_v13 }
  0xec   : > { %vm496_vm12 = vcmp.eq.s32.totalorder %v3515_v56, %v428_v33  ;;  %2766 = vmatpush3.msra.mxu0 %v2279_v23  ;;  %2841 = vmatprep.subr.mxu1 %v2361_v30  ;;  %vm289_vm13 = vcmp.eq.s32.totalorder %v3515_v56, %v223_v32  ;;  %v3004_v32 = vld [vmem:[%s3148_s25 + $0xc8] sm:$0xff] }
  0xed   : > { %2726 = vmatmul.mubr.msk.f32.gmra.mxu1 %vm288_vm10, %v3075_v13  ;;  %1116 = vperm.xlu0 %2987, %v3275_v36   ;;  %v2360_v36 = vld [vmem:[%s4165_s1 + $0x1d8] sm:$0xff]  ;;  %vm296_vm10 = vcmp.eq.s32.totalorder %v3515_v56, %v3483_v49 }
  0xee   : > { %2646 = vmatmul.mubr.msk.f32.gmra.mxu0 %vm496_vm12, %v3075_v13  ;;  %2980 = vset.pattern.permute.xlu1 %v3074_v29 }
  0xef   : > { %v229_v34 = vpop.permute.xlu0 %228  ;;  %1089 = vperm.xlu1 %2980, %v3202_v15   ;;  %v434_v35 = vpop.permute.xlu1 %433  ;;  %2648 = vmatprep.mubr.msk.f32.mxu0 %vm497_vm11, %v3075_v13 }
  0xf0   : > { %vm291_vm0 = vcmp.eq.s32.totalorder %v3515_v56, %v229_v34  ;;  %vm498_vm1 = vcmp.eq.s32.totalorder %v3515_v56, %v434_v35  ;;  %2728 = vmatprep.mubr.msk.f32.mxu1 %vm289_vm13, %v3075_v13  ;;  %2842 = vmatpush3.msra.mxu1 %v2361_v30  ;;  %vm505_vm13 = vcmp.eq.s32.totalorder %v3515_v56, %v3486_v50 }
  0xf1   : > { %2729 = vmatmul.mubr.msk.f32.gmra.mxu1 %vm290_vm14, %v3075_v13  ;;  %2767 = vmatprep.subr.mxu0 %v2278_v14  ;;  %vm298_vm14 = vcmp.eq.s32.totalorder %v3515_v56, %v3489_v4 }
  0xf2   : > { %2649 = vmatmul.mubr.msk.f32.gmra.mxu0 %vm498_vm1, %v3075_v13  ;;  %2731 = vmatprep.mubr.msk.f32.mxu1 %vm291_vm0, %v3075_v13  ;;  %vm507_vm1 = vcmp.eq.s32.totalorder %v3515_v56, %v3492_v51 }
  0xf3   : > { %v235_v38 = vpop.permute.xlu0 %234  ;;  %2981 = vset.pattern.permute.xlu1 %v3073_v28  ;;  %v440_v39 = vpop.permute.xlu1 %439  ;;  %2651 = vmatprep.mubr.msk.f32.mxu0 %vm499_vm15, %v3075_v13 }
  0xf4   : > { %vm293_vm3 = vcmp.eq.s32.totalorder %v3515_v56, %v235_v38  ;;  %vm500_vm4 = vcmp.eq.s32.totalorder %v3515_v56, %v440_v39  ;;  %1555 = vperm.xlu1 %2981, %v3202_v15   ;;  %2843 = vmatprep.subr.mxu1 %v2360_v36  ;;  %v2359_v15 = vld [vmem:[%s4165_s1 + $0x1d0] sm:$0xff] }
  0xf5   : > { %2732 = vmatmul.mubr.msk.f32.gmra.mxu1 %vm292_vm2, %v3075_v13  ;;  %2768 = vmatpush3.msra.mxu0 %v2278_v14  ;;  %vm300_vm2 = vcmp.eq.s32.totalorder %v3515_v56, %v3496_v5  ;;  %v2274_v5 = vld [vmem:[%s4165_s1 + $0x128] sm:$0xff] }
  0xf6   : > { %2652 = vmatmul.mubr.msk.f32.gmra.mxu0 %vm500_vm4, %v3075_v13  ;;  %2734 = vmatprep.mubr.msk.f32.mxu1 %vm293_vm3, %v3075_v13 }
  0xf7   : > { %2654 = vmatprep.mubr.msk.f32.mxu0 %vm501_vm5, %v3075_v13  ;;  %v241_v41 = vpop.permute.xlu0 %240  ;;  %v446_v42 = vpop.permute.xlu1 %445  ;;  %2769 = vmatprep.subr.mxu0 %v2277_v40  ;;  %vm509_vm5 = vcmp.eq.s32.totalorder %v3515_v56, %v3498_v52 }
  0xf8   : > { %vm295_vm7 = vcmp.eq.s32.totalorder %v3515_v56, %v241_v41  ;;  %vm502_vm8 = vcmp.eq.s32.totalorder %v3515_v56, %v446_v42  ;;  %1558 = vperm.xlu1 %2981, %v3207_v16   ;;  %2844 = vmatpush3.msra.mxu1 %v2360_v36  ;;  %v2276_v16 = vld [vmem:[%s4165_s1 + $0x138] sm:$0xff]  ;;  %v3005_v36 = vld [vmem:[%s3148_s25 + $0xd0] sm:$0xff]  ;;  %v3007_v42 = vld [vmem:[%s3148_s25 + $0xe8] sm:$0xff] }
  0xf9   : > { %2735 = vmatmul.mubr.msk.f32.gmra.mxu1 %vm294_vm6, %v3075_v13  ;;  %2770 = vmatpush3.msra.mxu0 %v2277_v40  ;;  %vm302_vm6 = vcmp.eq.s32.totalorder %v3515_v56, %v3503_v6  ;;  %v3006_v40 = vld [vmem:[%s3148_s25 + $0xd8] sm:$0xff] }
  0xfa   : > { %2655 = vmatmul.mubr.msk.f32.gmra.mxu0 %vm502_vm8, %v3075_v13  ;;  %2737 = vmatprep.mubr.msk.f32.mxu1 %vm295_vm7, %v3075_v13 }
  0xfb   : > { %2657 = vmatprep.mubr.msk.f32.mxu0 %vm503_vm9, %v3075_v13  ;;  %v247_v3 = vpop.permute.xlu0 %246  ;;  %v452_v43 = vpop.permute.xlu1 %451  ;;  %2845 = vmatprep.subr.mxu1 %v2359_v15  ;;  %vm511_vm9 = vcmp.eq.s32.totalorder %v3515_v56, %v3505_v53  ;;  %v2356_v53 = vld [vmem:[%s4165_s1 + $0x1b8] sm:$0xff] }
  0xfc   : > { %vm297_vm11 = vcmp.eq.s32.totalorder %v3515_v56, %v247_v3  ;;  %vm504_vm12 = vcmp.eq.s32.totalorder %v3515_v56, %v452_v43  ;;  %2982 = vset.pattern.permute.xlu1 %v3074_v29  ;;  %1119 = vperm.xlu0 %2987, %v3278_v37  }
  0xfd   : > { %2738 = vmatmul.mubr.msk.f32.gmra.mxu1 %vm296_vm10, %v3075_v13  ;;  %1098 = vperm.xlu1 %2982, %v3218_v19   ;;  %vm304_vm10 = vcmp.eq.s32.totalorder %v3515_v56, %v3509_v54  ;;  %v2355_v54 = vld [vmem:[%s4165_s1 + $0x1b0] sm:$0xff] }
  0xfe   : > { %2658 = vmatmul.mubr.msk.f32.gmra.mxu0 %vm504_vm12, %v3075_v13  ;;  %2740 = vmatprep.mubr.msk.f32.mxu1 %vm297_vm11, %v3075_v13 }
  0xff   : > { %2660 = vmatprep.mubr.msk.f32.mxu0 %vm505_vm13, %v3075_v13  ;;  %v253_v44 = vpop.permute.xlu0 %252  ;;  %v458_v45 = vpop.permute.xlu1 %457  ;;  %2771 = vmatprep.subr.mxu0 %v2276_v16  ;;  %vm513_vm13 = vcmp.eq.s32.totalorder %v3515_v56, %v3511_v55  ;;  %v2272_v55 = vld [vmem:[%s4165_s1 + $0x118] sm:$0xff] }
 0x100   : > { %vm299_vm15 = vcmp.eq.s32.totalorder %v3515_v56, %v253_v44  ;;  %vm506_vm0 = vcmp.eq.s32.totalorder %v3515_v56, %v458_v45  ;;  %2846 = vmatpush3.msra.mxu1 %v2359_v15  ;;  %2772 = vmatpush3.msra.mxu0 %v2276_v16  ;;  %v3008_v44 = vld [vmem:[%s3148_s25 + $0xf0] sm:$0xff] }
 0x101   : > { %2741 = vmatmul.mubr.msk.f32.gmra.mxu1 %vm298_vm14, %v3075_v13  ;;  %2983 = vset.pattern.permute.xlu1 %v3073_v28 }
 0x102   : > { %2661 = vmatmul.mubr.msk.f32.gmra.mxu0 %vm506_vm0, %v3075_v13  ;;  %1564 = vperm.xlu1 %2983, %v3218_v19   ;;  %v2357_v19 = vld [vmem:[%s4165_s1 + $0x1c0] sm:$0xff] }
 0x103   : > { %2663 = vmatprep.mubr.msk.f32.mxu0 %vm507_vm1, %v3075_v13  ;;  %v259_v49 = vpop.permute.xlu0 %258  ;;  %v464_v50 = vpop.permute.xlu1 %463  ;;  %2743 = vmatprep.mubr.msk.f32.mxu1 %vm299_vm15, %v3075_v13 }
 0x104   : > { %vm508_vm3 = vcmp.eq.s32.totalorder %v3515_v56, %v464_v50  ;;  %2847 = vmatprep.subr.mxu1 %v2358_v2  ;;  %2773 = vmatprep.subr.mxu0 %v2275_v48  ;;  %vm301_vm4 = vcmp.eq.s32.totalorder %v3515_v56, %v259_v49 }
 0x105   : > { %2744 = vmatmul.mubr.msk.f32.gmra.mxu1 %vm300_vm2, %v3075_v13  ;;  %2774 = vmatpush3.msra.mxu0 %v2275_v48 }
 0x106   : > { %2664 = vmatmul.mubr.msk.f32.gmra.mxu0 %vm508_vm3, %v3075_v13  ;;  %2984 = vset.pattern.permute.xlu1 %v3074_v29 }
 0x107   : > { %2666 = vmatprep.mubr.msk.f32.mxu0 %vm509_vm5, %v3075_v13  ;;  %v265_v4 = vpop.permute.xlu0 %264  ;;  %1101 = vperm.xlu1 %2984, %v3221_v20   ;;  %v470_v51 = vpop.permute.xlu1 %469 }
 0x108   : > { %vm303_vm7 = vcmp.eq.s32.totalorder %v3515_v56, %v265_v4  ;;  %vm510_vm8 = vcmp.eq.s32.totalorder %v3515_v56, %v470_v51  ;;  %2746 = vmatprep.mubr.msk.f32.mxu1 %vm301_vm4, %v3075_v13  ;;  %2848 = vmatpush3.msra.mxu1 %v2358_v2 }
 0x109   : > { %2747 = vmatmul.mubr.msk.f32.gmra.mxu1 %vm302_vm6, %v3075_v13  ;;  %2849 = vmatprep.subr.mxu1 %v2357_v19 }
 0x10a   : > { %2667 = vmatmul.mubr.msk.f32.gmra.mxu0 %vm510_vm8, %v3075_v13  ;;  %2749 = vmatprep.mubr.msk.f32.mxu1 %vm303_vm7, %v3075_v13 }
 0x10b   : > { %2669 = vmatprep.mubr.msk.f32.mxu0 %vm511_vm9, %v3075_v13  ;;  %v271_v52 = vpop.permute.xlu0 %270  ;;  %2985 = vset.pattern.permute.xlu1 %v3073_v28  ;;  %v476_v6 = vpop.permute.xlu1 %475 }
 0x10c   : > { %vm512_vm11 = vcmp.eq.s32.totalorder %v3515_v56, %v476_v6  ;;  %1567 = vperm.xlu1 %2985, %v3221_v20   ;;  %1128 = vperm.xlu0 %2987, %v3309_v46   ;;  %vm305_vm12 = vcmp.eq.s32.totalorder %v3515_v56, %v271_v52 }
 0x10d   : > { %2750 = vmatmul.mubr.msk.f32.gmra.mxu1 %vm304_vm10, %v3075_v13  ;;  %2775 = vmatprep.subr.mxu0 %v2274_v5 }
 0x10e   : > { %2670 = vmatmul.mubr.msk.f32.gmra.mxu0 %vm512_vm11, %v3075_v13  ;;  %2850 = vmatpush3.msra.mxu1 %v2357_v19 }
 0x10f   : > { %2672 = vmatprep.mubr.msk.f32.mxu0 %vm513_vm13, %v3075_v13  ;;  %2851 = vmatprep.subr.mxu1 %v2356_v53  ;;  %v274_v20 = vpop.permute.xlu0 %273  ;;  %v482_v46 = vpop.permute.xlu1 %481 }
 0x110   : > { %vm306_vm14 = vcmp.eq.s32.totalorder %v3515_v56, %v274_v20  ;;  %2776 = vmatpush3.msra.mxu0 %v2274_v5  ;;  %vm514_vm15 = vcmp.eq.s32.totalorder %v3515_v56, %v482_v46  ;;  %2752 = vmatprep.mubr.msk.f32.mxu1 %vm305_vm12, %v3075_v13 }
 0x111   : > { %2852 = vmatpush3.msra.mxu1 %v2356_v53  ;;  %1570 = vperm.xlu1 %2985, %v3241_v26  }
 0x112   : > { %2777 = vmatprep.subr.mxu0 %v2273_v9  ;;  %2673 = vmatmul.mubr.msk.f32.gmra.mxu0 %vm514_vm15, %v3075_v13 }
 0x113   : > { %2753 = vmatmul.mubr.msk.f32.gmra.mxu1 %vm306_vm14, %v3075_v13  ;;  %2778 = vmatpush3.msra.mxu0 %v2273_v9 }
 0x114   : > { %2853 = vmatprep.subr.mxu1 %v2355_v54  ;;  %1131 = vperm.xlu0 %2987, %v3312_v47   ;;  %v1048_v26 = vpop.permute.xlu1 %1047  ;;  %v1514_v8 = vpop.permute.xlu0 %1513 }
 0x115   : > { %2779 = vmatprep.subr.mxu0 %v2272_v55  ;;  %2854 = vmatpush3.msra.mxu1 %v2355_v54  ;;  %vm1142_vm0 = vcmp.eq.s32.totalorder %v3515_v56, %v1048_v26  ;;  %vm1608_vm2 = vcmp.eq.s32.totalorder %v3515_v56, %v1514_v8 }
 0x116   : > { %2780 = vmatpush3.msra.mxu0 %v2272_v55  ;;  %2855 = vmatprep.subr.mxu1 %v2354_v7 }
 0x117   : > { %2856 = vmatpush3.msra.mxu1 %v2354_v7  ;;  %2986 = vset.pattern.permute.xlu1 %v3074_v29 }
 0x118   : > { %2781 = vmatprep.subr.mxu0 %v2271_v57  ;;  %2857 = vmatprep.subr.mxu1 %v2353_v17  ;;  %v1051_v10 = vpop.permute.xlu1 %1050  ;;  %v1526_v59 = vpop.permute.xlu0 %1525 }
 0x119   : > { %1110 = vperm.xlu1 %2986, %v3258_v31   ;;  %2782 = vmatpush3.msra.mxu0 %v2271_v57  ;;  %vm1143_vm1 = vcmp.eq.s32.totalorder %v3515_v56, %v1051_v10  ;;  %vm1612_vm6 = vcmp.eq.s32.totalorder %v3515_v56, %v1526_v59 }
 0x11a   : > { %2783 = vmatprep.subr.mxu0 %v2270_v58  ;;  %2787 = vmatprep.mubr.msk.f32.mxu0 %vm1142_vm0, %v3075_v13 }
 0x11b   : > { %2858 = vmatpush3.msra.mxu1 %v2353_v17  ;;  %2784 = vmatpush3.msra.mxu0 %v2270_v58 }
 0x11c   : > { %2859 = vmatprep.subr.mxu1 %v2352_v60  ;;  %2785 = vmatprep.subr.mxu0 %v2269_v61  ;;  %v3798_v63 = vpop.permute.xlu0 %1537 }
 0x11d   : > { %2860 = vmatpush3.msra.mxu1 %v2352_v60  ;;  %2988 = vset.pattern.permute.xlu1 %v3073_v28  ;;  %v1517_v1 = vpop.permute.xlu1 %1516  ;;  %vm1616_vm0 = vcmp.eq.s32.totalorder %v3515_v56, %v3798_v63 }
 0x11e   : > { %2861 = vmatprep.subr.mxu1 %v2351_v62  ;;  %2786 = vmatpush3.msra.mxu0 %v2269_v61  ;;  %vm1609_vm3 = vcmp.eq.s32.totalorder %v3515_v56, %v1517_v1 }
 0x11f   : > { %2862 = vmatpush3.msra.mxu1 %v2351_v62  ;;  %1576 = vperm.xlu1 %2988, %v3258_v31   ;;  %v3002_v31 = vld [vmem:[%s3148_s25 + $0xb0] sm:$0xff]  ;;  %s135_s25 = sand.u32 1, %s3061_s10  }
 0x120   : > { %2788 = vmatmul.mubr.msk.f32.vlgmr.msra.gmra.mxu0 %vm1143_vm1, %v3075_v13  ;;  %2863 = vmatprep.subr.mxu1 %v2350_v0  ;;  %v3811_v11 = vpop.permute.xlu0 %1549  ;;  %s2090_s28 = sshll.u32 %s135_s25, 8  ;;  %s4124_s13 = scalar_lea.sflag [#allocation3], %s135_s25 }
 0x121   : > { %2864 = vmatpush3.msra.mxu1 %v2350_v0  ;;  %2867 = vmatprep.mubr.msk.f32.mxu1 %vm1608_vm2, %v3075_v13  ;;  %s4049_s29 = scalar_lea.vmem [#allocation2], %s2090_s28 }
 0x122   : > { %2865 = vmatprep.subr.mxu1 %v2349_v18  ;;  %v1054_v22 = vpop.permute.xlu1 %1053  ;;  %2995 = vset.pattern.permute.xlu0 %v3073_v28  ;;  %s2024_s3 = sshll.u32 %s4049_s29, 4  ;;  %s4118_s3 = int_to_ptr.vmem [resolvable:$true] %s2024_s3 }
 0x123   : > { %2866 = vmatpush3.msra.mxu1 %v2349_v18  ;;  %2989 = vset.pattern.permute.xlu1 %v3074_v29  ;;  %vm1144_vm4 = vcmp.eq.s32.totalorder %v3515_v56, %v1054_v22  ;;  %s3009_s7 = scalar_lea.vmem %s4118_s3, 4096  ;;  %p3016_p0 = scmp.lt.s32.totalorder %s4118_s3, %s3014_s14 }
 0x124   : > { %1113 = vperm.xlu1 %2989, %v3002_v31   ;;  %2868 = vmatmul.mubr.msk.f32.vlgmr.msra.gmra.mxu1 %vm1609_vm3, %v3075_v13  ;;  %v3820_v12 = vpop.permute.xlu0 %1561  ;;  %p3010_p11 = scmp.ne.s32.totalorder %s4118_s3, %s3009_s7  ;;  %p3017_p1 = scmp.lt.s32.totalorder %s3015_s16, %s3009_s7 }
 0x125   : > { %2790 = vmatprep.mubr.msk.f32.mxu0 %vm1144_vm4, %v3075_v13  ;;  %1585 = vperm.xlu0 %2995, %v3278_v37  }
 0x126   : > { %p3011_p12 = pnand %p3010_p11, %p3132_p5  ;;  %p3018_p2 = por %p3017_p1, %p3016_p0 }
 0x127   : > { %v1520_v27 = vpop.permute.xlu1 %1519 }
 0x128   : > { %2990 = vset.pattern.permute.xlu1 %v3073_v28  ;;  %vm1610_vm5 = vcmp.eq.s32.totalorder %v3515_v56, %v1520_v27  ;;  %v3826_v23 = vpop.permute.xlu0 %1573  ;;  %p3012_p13 = pneg %p3011_p12 }
 0x129   : > { %1579 = vperm.xlu1 %2990, %v3002_v31   ;;  %2870 = vmatprep.mubr.msk.f32.mxu1 %vm1610_vm5, %v3075_v13 }
 0x12a   : > { %1597 = vperm.xlu0 %2995, %v3312_v47   ;;  %p3019_p3 = pnand %p3018_p2, %p3012_p13 }
 0x12b   : > { %v1523_v24 = vpop.permute.xlu1 %1522 }
 0x12c   : > { %vm1611_vm7 = vcmp.eq.s32.totalorder %v3515_v56, %v1523_v24 }
 0x12d   : > { %1582 = vperm.xlu1 %2990, %v3003_v25   ;;  %v1057_v37 = vpop.permute.xlu0 %1056  ;;  %2871 = vmatmul.mubr.msk.f32.gmra.mxu1 %vm1611_vm7, %v3075_v13 }
 0x12e   : > { %vm1145_vm8 = vcmp.eq.s32.totalorder %v3515_v56, %v1057_v37  ;;  %2873 = vmatprep.mubr.msk.f32.mxu1 %vm1612_vm6, %v3075_v13  ;;  %2999 = vset.pattern.permute.xlu0 %v3074_v29 }
 0x12f   : > { %2791 = vmatmul.mubr.msk.f32.gmra.mxu0 %vm1145_vm8, %v3075_v13  ;;  %1140 = vperm.xlu0 %2999, %v3416_v21   ;;  %vm1620_vm8 = vcmp.eq.s32.totalorder %v3515_v56, %v3811_v11 }
 0x130   : > { %v1063_v47 = vpop.permute.xlu1 %1062 }
 0x131   : > { %2991 = vset.pattern.permute.xlu1 %v3074_v29  ;;  %v1060_v30 = vpop.permute.xlu0 %1059  ;;  %vm1147_vm10 = vcmp.eq.s32.totalorder %v3515_v56, %v1063_v47 }
 0x132   : > { %1122 = vperm.xlu1 %2991, %v3004_v32   ;;  %vm1146_vm9 = vcmp.eq.s32.totalorder %v3515_v56, %v1060_v30 }
 0x133   : > { %2793 = vmatprep.mubr.msk.f32.mxu0 %vm1146_vm9, %v3075_v13  ;;  %3001 = vset.pattern.permute.xlu0 %v3073_v28 }
 0x134   : > { %2794 = vmatmul.mubr.msk.f32.gmra.mxu0 %vm1147_vm10, %v3075_v13 }
 0x135   : > { %v1529_v33 = vpop.permute.xlu1 %1528  ;;  %v1069_v14 = vpop.permute.xlu0 %1068 }
 0x136   : > { %2992 = vset.pattern.permute.xlu1 %v3073_v28  ;;  %vm1613_vm11 = vcmp.eq.s32.totalorder %v3515_v56, %v1529_v33  ;;  %vm1149_vm12 = vcmp.eq.s32.totalorder %v3515_v56, %v1069_v14 }
 0x137   : > { %1588 = vperm.xlu1 %2992, %v3004_v32   ;;  %2874 = vmatmul.mubr.msk.f32.gmra.mxu1 %vm1613_vm11, %v3075_v13 }
 0x139   : > { %v1072_v34 = vpop.permute.xlu0 %1071 }
 0x13a   : > { %v1066_v35 = vpop.permute.xlu1 %1065  ;;  %vm1150_vm14 = vcmp.eq.s32.totalorder %v3515_v56, %v1072_v34 }
 0x13b   : > { %2993 = vset.pattern.permute.xlu1 %v3074_v29  ;;  %vm1148_vm13 = vcmp.eq.s32.totalorder %v3515_v56, %v1066_v35 }
 0x13c   : > { %1125 = vperm.xlu1 %2993, %v3005_v36   ;;  %2796 = vmatprep.mubr.msk.f32.mxu0 %vm1148_vm13, %v3075_v13 }
 0x13d   : > { %2797 = vmatmul.mubr.msk.f32.gmra.mxu0 %vm1149_vm12, %v3075_v13  ;;  %v1081_v15 = vpop.permute.xlu0 %1080 }
 0x13e   : > { %2799 = vmatprep.mubr.msk.f32.mxu0 %vm1150_vm14, %v3075_v13  ;;  %vm1153_vm4 = vcmp.eq.s32.totalorder %v3515_v56, %v1081_v15 }
 0x13f   : > { %v1532_v38 = vpop.permute.xlu1 %1531 }
 0x140   : > { %2994 = vset.pattern.permute.xlu1 %v3073_v28  ;;  %vm1614_vm15 = vcmp.eq.s32.totalorder %v3515_v56, %v1532_v38 }
 0x141   : > { %1591 = vperm.xlu1 %2994, %v3005_v36   ;;  %2876 = vmatprep.mubr.msk.f32.mxu1 %vm1614_vm15, %v3075_v13  ;;  %v1084_v43 = vpop.permute.xlu0 %1083 }
 0x142   : > { %vm1154_vm6 = vcmp.eq.s32.totalorder %v3515_v56, %v1084_v43 }
 0x143   : > { %v1535_v39 = vpop.permute.xlu1 %1534 }
 0x144   : > { %vm1615_vm1 = vcmp.eq.s32.totalorder %v3515_v56, %v1535_v39 }
 0x145   : > { %1594 = vperm.xlu1 %2994, %v3006_v40   ;;  %2877 = vmatmul.mubr.msk.f32.gmra.mxu1 %vm1615_vm1, %v3075_v13  ;;  %v1093_v48 = vpop.permute.xlu0 %1092 }
 0x146   : > { %2879 = vmatprep.mubr.msk.f32.mxu1 %vm1616_vm0, %v3075_v13  ;;  %vm1157_vm12 = vcmp.eq.s32.totalorder %v3515_v56, %v1093_v48  ;;  %vm1624_vm0 = vcmp.eq.s32.totalorder %v3515_v56, %v3820_v12 }
 0x148   : > { %v1075_v41 = vpop.permute.xlu1 %1074 }
 0x149   : > { %2996 = vset.pattern.permute.xlu1 %v3074_v29  ;;  %vm1151_vm2 = vcmp.eq.s32.totalorder %v3515_v56, %v1075_v41  ;;  %v1096_v50 = vpop.permute.xlu0 %1095 }
 0x14a   : > { %1134 = vperm.xlu1 %2996, %v3007_v42   ;;  %2800 = vmatmul.mubr.msk.f32.gmra.mxu0 %vm1151_vm2, %v3075_v13  ;;  %vm1158_vm14 = vcmp.eq.s32.totalorder %v3515_v56, %v1096_v50 }
 0x14d   : > { %v1541_v3 = vpop.permute.xlu1 %1540 }
 0x14e   : > { %2997 = vset.pattern.permute.xlu1 %v3073_v28  ;;  %vm1617_vm3 = vcmp.eq.s32.totalorder %v3515_v56, %v1541_v3 }
 0x14f   : > { %1600 = vperm.xlu1 %2997, %v3007_v42   ;;  %2880 = vmatmul.mubr.msk.f32.gmra.mxu1 %vm1617_vm3, %v3075_v13  ;;  %v1105_v51 = vpop.permute.xlu0 %1104 }
 0x152   : > { %v1078_v16 = vpop.permute.xlu1 %1077 }
 0x153   : > { %2998 = vset.pattern.permute.xlu1 %v3074_v29  ;;  %vm1152_vm5 = vcmp.eq.s32.totalorder %v3515_v56, %v1078_v16 }
 0x154   : > { %1137 = vperm.xlu1 %2998, %v3008_v44   ;;  %2802 = vmatprep.mubr.msk.f32.mxu0 %vm1152_vm5, %v3075_v13 }
 0x155   : > { %2803 = vmatmul.mubr.msk.f32.gmra.mxu0 %vm1153_vm4, %v3075_v13  ;;  %vm1161_vm4 = vcmp.eq.s32.totalorder %v3515_v56, %v1105_v51 }
 0x156   : > { %2805 = vmatprep.mubr.msk.f32.mxu0 %vm1154_vm6, %v3075_v13 }
 0x157   : > { %v1544_v45 = vpop.permute.xlu1 %1543 }
 0x158   : > { %3000 = vset.pattern.permute.xlu1 %v3073_v28  ;;  %vm1618_vm7 = vcmp.eq.s32.totalorder %v3515_v56, %v1544_v45 }
 0x159   : > { %1603 = vperm.xlu1 %3000, %v3008_v44   ;;  %2882 = vmatprep.mubr.msk.f32.mxu1 %vm1618_vm7, %v3075_v13 }
 0x15b   : > { %v1547_v29 = vpop.permute.xlu1 %1546  ;;  %v1108_v52 = vpop.permute.xlu0 %1107 }
 0x15c   : > { %vm1619_vm9 = vcmp.eq.s32.totalorder %v3515_v56, %v1547_v29  ;;  %vm1162_vm5 = vcmp.eq.s32.totalorder %v3515_v56, %v1108_v52 }
 0x15d   : > { %1606 = vperm.xlu1 %3000, %v3416_v21   ;;  %2883 = vmatmul.mubr.msk.f32.gmra.mxu1 %vm1619_vm9, %v3075_v13  ;;  %vm1628_vm9 = vcmp.eq.s32.totalorder %v3515_v56, %v3826_v23 }
 0x15e   : > { %2885 = vmatprep.mubr.msk.f32.mxu1 %vm1620_vm8, %v3075_v13 }
 0x160   : > { %v1087_v2 = vpop.permute.xlu1 %1086 }
 0x161   : > { %vm1155_vm10 = vcmp.eq.s32.totalorder %v3515_v56, %v1087_v2 }
 0x162   : > { %2806 = vmatmul.mubr.msk.f32.gmra.mxu0 %vm1155_vm10, %v3075_v13 }
 0x165   : > { %v1553_v28 = vpop.permute.xlu1 %1552 }
 0x166   : > { %vm1621_vm11 = vcmp.eq.s32.totalorder %v3515_v56, %v1553_v28 }
 0x167   : > { %2886 = vmatmul.mubr.msk.f32.gmra.mxu1 %vm1621_vm11, %v3075_v13 }
 0x168   : > { %v1117_v46 = vpop.permute.xlu0 %1116 }
 0x16a   : > { %v1090_v49 = vpop.permute.xlu1 %1089 }
 0x16b   : > { %vm1156_vm13 = vcmp.eq.s32.totalorder %v3515_v56, %v1090_v49 }
 0x16c   : > { %2808 = vmatprep.mubr.msk.f32.mxu0 %vm1156_vm13, %v3075_v13  ;;  %vm1165_vm13 = vcmp.eq.s32.totalorder %v3515_v56, %v1117_v46 }
 0x16d   : > { %2809 = vmatmul.mubr.msk.f32.gmra.mxu0 %vm1157_vm12, %v3075_v13 }
 0x16e   : > { %2811 = vmatprep.mubr.msk.f32.mxu0 %vm1158_vm14, %v3075_v13 }
 0x16f   : > { %v1556_v21 = vpop.permute.xlu1 %1555 }
 0x170   : > { %vm1622_vm15 = vcmp.eq.s32.totalorder %v3515_v56, %v1556_v21 }
 0x171   : > { %2888 = vmatprep.mubr.msk.f32.mxu1 %vm1622_vm15, %v3075_v13 }
 0x173   : > { %v1559_v19 = vpop.permute.xlu1 %1558 }
 0x174   : > { %vm1623_vm1 = vcmp.eq.s32.totalorder %v3515_v56, %v1559_v19 }
 0x175   : > { %2889 = vmatmul.mubr.msk.f32.gmra.mxu1 %vm1623_vm1, %v3075_v13 }
 0x176   : > { %2891 = vmatprep.mubr.msk.f32.mxu1 %vm1624_vm0, %v3075_v13 }
 0x177   : > { %v1120_v54 = vpop.permute.xlu0 %1119 }
 0x178   : > { %v1099_v4 = vpop.permute.xlu1 %1098  ;;  %vm1166_vm14 = vcmp.eq.s32.totalorder %v3515_v56, %v1120_v54 }
 0x179   : > { %vm1159_vm2 = vcmp.eq.s32.totalorder %v3515_v56, %v1099_v4 }
 0x17a   : > { %2812 = vmatmul.mubr.msk.f32.gmra.mxu0 %vm1159_vm2, %v3075_v13 }
 0x17d   : > { %v1565_v5 = vpop.permute.xlu1 %1564 }
 0x17e   : > { %vm1625_vm3 = vcmp.eq.s32.totalorder %v3515_v56, %v1565_v5 }
 0x17f   : > { %2892 = vmatmul.mubr.msk.f32.gmra.mxu1 %vm1625_vm3, %v3075_v13 }
 0x182   : > { %v1102_v6 = vpop.permute.xlu1 %1101 }
 0x183   : > { %vm1160_vm6 = vcmp.eq.s32.totalorder %v3515_v56, %v1102_v6 }
 0x184   : > { %2814 = vmatprep.mubr.msk.f32.mxu0 %vm1160_vm6, %v3075_v13 }
 0x185   : > { %2815 = vmatmul.mubr.msk.f32.gmra.mxu0 %vm1161_vm4, %v3075_v13 }
 0x186   : > { %2817 = vmatprep.mubr.msk.f32.mxu0 %vm1162_vm5, %v3075_v13 }
 0x187   : > { %v1568_v53 = vpop.permute.xlu1 %1567  ;;  %v3934_v58 = vpop.permute.xlu0 %1128 }
 0x188   : > { %vm1626_vm7 = vcmp.eq.s32.totalorder %v3515_v56, %v1568_v53  ;;  %vm1169_vm5 = vcmp.eq.s32.totalorder %v3515_v56, %v3934_v58 }
 0x189   : > { %2894 = vmatprep.mubr.msk.f32.mxu1 %vm1626_vm7, %v3075_v13 }
 0x18c   : > { %v1571_v20 = vpop.permute.xlu1 %1570 }
 0x18d   : > { %vm1627_vm8 = vcmp.eq.s32.totalorder %v3515_v56, %v1571_v20 }
 0x18e   : > { %2895 = vmatmul.mubr.msk.f32.gmra.mxu1 %vm1627_vm8, %v3075_v13 }
 0x18f   : > { %2897 = vmatprep.mubr.msk.f32.mxu1 %vm1628_vm9, %v3075_v13  ;;  %v3946_v31 = vpop.permute.xlu0 %1131 }
 0x190   : > { %vm1170_vm6 = vcmp.eq.s32.totalorder %v3515_v56, %v3946_v31 }
 0x192   : > { %v3924_v9 = vpop.f32.mrf.mxu0 }
 0x194   : > { %v1111_v55 = vpop.permute.xlu1 %1110  ;;  %v3929_v26 = vpop.f32.mrf.mxu0 }
 0x195   : > { %vm1163_vm10 = vcmp.eq.s32.totalorder %v3515_v56, %v1111_v55  ;;  %v3927_v7 = vpop.f32.mrf.mxu1 }
 0x196   : > { %2818 = vmatmul.mubr.msk.f32.gmra.mxu0 %vm1163_vm10, %v3075_v13 }
 0x197   : > { %v3932_v8 = vpop.f32.mrf.mxu1 }
 0x199   : > { %v2632_v57 = vpop.f32.mrf.mxu0  ;;  %v2712_v17 = vpop.f32.mrf.mxu1 }
 0x19a   : > { %v1577_v10 = vpop.permute.xlu1 %1576  ;;  %v3936_v59 = vadd.f32 %v2712_v17, %v2632_v57 }
 0x19b   : > { %vm1629_vm11 = vcmp.eq.s32.totalorder %v3515_v56, %v1577_v10  ;;  %v672_v60 = vpop.f32.mrf.mxu0  ;;  %v897_v61 = vpop.f32.mrf.mxu1 }
 0x19c   : > { %2898 = vmatmul.mubr.msk.f32.gmra.mxu1 %vm1629_vm11, %v3075_v13  ;;  %v3940_v62 = vadd.f32 %v897_v61, %v672_v60 }
 0x19d   : > { %v2635_v63 = vpop.f32.mrf.mxu0  ;;  %v2715_v0 = vpop.f32.mrf.mxu1 }
 0x19e   : > { %v3942_v1 = vadd.f32 %v2715_v0, %v2635_v63 }
 0x19f   : > { %v1114_v18 = vpop.permute.xlu1 %1113  ;;  %v682_v11 = vpop.f32.mrf.mxu0 }
 0x1a0   : > { %vm1164_vm12 = vcmp.eq.s32.totalorder %v3515_v56, %v1114_v18  ;;  %v907_v22 = vpop.f32.mrf.mxu1  ;;  %v1586_v32 = vpop.permute.xlu0 %1585 }
 0x1a1   : > { %2820 = vmatprep.mubr.msk.f32.mxu0 %vm1164_vm12, %v3075_v13  ;;  %v3949_v12 = vadd.f32 %v907_v22, %v682_v11  ;;  %v2638_v27 = vpop.f32.mrf.mxu0  ;;  %vm1632_vm0 = vcmp.eq.s32.totalorder %v3515_v56, %v1586_v32 }
 0x1a2   : > { %2821 = vmatmul.mubr.msk.f32.gmra.mxu0 %vm1165_vm13, %v3075_v13  ;;  %v2718_v23 = vpop.f32.mrf.mxu1 }
 0x1a3   : > { %2823 = vmatprep.mubr.msk.f32.mxu0 %vm1166_vm14, %v3075_v13  ;;  %v3954_v24 = vadd.f32 %v2718_v23, %v2638_v27  ;;  %v692_v25 = vpop.f32.mrf.mxu0 }
 0x1a4   : > { %v1580_v37 = vpop.permute.xlu1 %1579  ;;  %v917_v47 = vpop.f32.mrf.mxu1 }
 0x1a5   : > { %vm1630_vm15 = vcmp.eq.s32.totalorder %v3515_v56, %v1580_v37  ;;  %v3957_v30 = vadd.f32 %v917_v47, %v692_v25  ;;  %v1598_v63 = vpop.permute.xlu0 %1597 }
 0x1a6   : > { %2900 = vmatprep.mubr.msk.f32.mxu1 %vm1630_vm15, %v3075_v13  ;;  %v2641_v33 = vpop.f32.mrf.mxu0  ;;  %v2721_v14 = vpop.f32.mrf.mxu1  ;;  %vm1636_vm8 = vcmp.eq.s32.totalorder %v3515_v56, %v1598_v63 }
 0x1a7   : > { %v3960_v34 = vadd.f32 %v2721_v14, %v2641_v33 }
 0x1a8   : > { %v1583_v35 = vpop.permute.xlu1 %1582  ;;  %v702_v36 = vpop.f32.mrf.mxu0 }
 0x1a9   : > { %vm1631_vm1 = vcmp.eq.s32.totalorder %v3515_v56, %v1583_v35  ;;  %v927_v38 = vpop.f32.mrf.mxu1 }
 0x1aa   : > { %2901 = vmatmul.mubr.msk.f32.gmra.mxu1 %vm1631_vm1, %v3075_v13  ;;  %v3965_v39 = vadd.f32 %v927_v38, %v702_v36  ;;  %v2644_v40 = vpop.f32.mrf.mxu0 }
 0x1ab   : > { %v2724_v41 = vpop.f32.mrf.mxu1  ;;  %2903 = vmatprep.mubr.msk.f32.mxu1 %vm1632_vm0, %v3075_v13 }
 0x1ac   : > { %v3968_v42 = vadd.f32 %v2724_v41, %v2644_v40  ;;  %v712_v15 = vpop.f32.mrf.mxu0 }
 0x1ad   : > { %v1123_v3 = vpop.permute.xlu1 %1122  ;;  %v937_v43 = vpop.f32.mrf.mxu1 }
 0x1ae   : > { %vm1167_vm2 = vcmp.eq.s32.totalorder %v3515_v56, %v1123_v3  ;;  %v3971_v16 = vadd.f32 %v937_v43, %v712_v15  ;;  %v2647_v44 = vpop.f32.mrf.mxu0 }
 0x1af   : > { %2824 = vmatmul.mubr.msk.f32.gmra.mxu0 %vm1167_vm2, %v3075_v13  ;;  %v2727_v45 = vpop.f32.mrf.mxu1 }
 0x1b0   : > { %v3974_v29 = vadd.f32 %v2727_v45, %v2647_v44  ;;  %v722_v2 = vpop.f32.mrf.mxu0 }
 0x1b1   : > { %v947_v28 = vpop.f32.mrf.mxu1 }
 0x1b2   : > { %v1589_v48 = vpop.permute.xlu1 %1588  ;;  %v3976_v49 = vadd.f32 %v947_v28, %v722_v2  ;;  %v2650_v50 = vpop.f32.mrf.mxu0 }
 0x1b3   : > { %vm1633_vm3 = vcmp.eq.s32.totalorder %v3515_v56, %v1589_v48  ;;  %v2730_v21 = vpop.f32.mrf.mxu1  ;;  %v1141_v48 = vpop.permute.xlu0 %1140 }
 0x1b4   : > { %2904 = vmatmul.mubr.msk.f32.gmra.mxu1 %vm1633_vm3, %v3075_v13  ;;  %v3980_v19 = vadd.f32 %v2730_v21, %v2650_v50  ;;  %v732_v4 = vpop.f32.mrf.mxu0  ;;  %vm1173_vm12 = vcmp.eq.s32.totalorder %v3515_v56, %v1141_v48 }
 0x1b5   : > { %v957_v51 = vpop.f32.mrf.mxu1 }
 0x1b6   : > { %v3982_v5 = vadd.f32 %v957_v51, %v732_v4  ;;  %v2653_v52 = vpop.f32.mrf.mxu0 }
 0x1b7   : > { %v1126_v6 = vpop.permute.xlu1 %1125  ;;  %v2733_v53 = vpop.f32.mrf.mxu1 }
 0x1b8   : > { %vm1168_vm4 = vcmp.eq.s32.totalorder %v3515_v56, %v1126_v6  ;;  %v3985_v20 = vadd.f32 %v2733_v53, %v2653_v52  ;;  %v742_v46 = vpop.f32.mrf.mxu0 }
 0x1b9   : > { %2826 = vmatprep.mubr.msk.f32.mxu0 %vm1168_vm4, %v3075_v13  ;;  %v967_v54 = vpop.f32.mrf.mxu1 }
 0x1ba   : > { %2827 = vmatmul.mubr.msk.f32.gmra.mxu0 %vm1169_vm5, %v3075_v13  ;;  %v3993_v55 = vadd.f32 %v967_v54, %v742_v46  ;;  %v2656_v57 = vpop.f32.mrf.mxu0 }
 0x1bb   : > { %2829 = vmatprep.mubr.msk.f32.mxu0 %vm1170_vm6, %v3075_v13  ;;  %v2736_v17 = vpop.f32.mrf.mxu1 }
 0x1bc   : > { %v1592_v10 = vpop.permute.xlu1 %1591  ;;  %v3996_v60 = vadd.f32 %v2736_v17, %v2656_v57  ;;  %v752_v61 = vpop.f32.mrf.mxu0 }
 0x1bd   : > { %vm1634_vm7 = vcmp.eq.s32.totalorder %v3515_v56, %v1592_v10  ;;  %v977_v58 = vpop.f32.mrf.mxu1 }
 0x1be   : > { %2906 = vmatprep.mubr.msk.f32.mxu1 %vm1634_vm7, %v3075_v13  ;;  %v4000_v0 = vadd.f32 %v977_v58, %v752_v61  ;;  %v2659_v18 = vpop.f32.mrf.mxu0 }
 0x1bf   : > { %v2739_v11 = vpop.f32.mrf.mxu1 }
 0x1c0   : > { %v1595_v22 = vpop.permute.xlu1 %1594  ;;  %v4002_v31 = vadd.f32 %v2739_v11, %v2659_v18  ;;  %v762_v27 = vpop.f32.mrf.mxu0 }
 0x1c1   : > { %vm1635_vm9 = vcmp.eq.s32.totalorder %v3515_v56, %v1595_v22  ;;  %v987_v23 = vpop.f32.mrf.mxu1 }
 0x1c2   : > { %2907 = vmatmul.mubr.msk.f32.gmra.mxu1 %vm1635_vm9, %v3075_v13  ;;  %v4007_v25 = vadd.f32 %v987_v23, %v762_v27  ;;  %v2662_v37 = vpop.f32.mrf.mxu0  ;;  %v893_v23 = vadd.f32 %v3927_v7, %v3924_v9 }
 0x1c3   : > { %v2742_v47 = vpop.f32.mrf.mxu1  ;;  %2909 = vmatprep.mubr.msk.f32.mxu1 %vm1636_vm8, %v3075_v13 }
 0x1c4   : > { %v4010_v32 = vadd.f32 %v2742_v47, %v2662_v37  ;;  %v772_v33 = vpop.f32.mrf.mxu0  ;;  %v888_v47 = vadd.f32 %v3932_v8, %v3929_v26 }
 0x1c5   : > { %v1135_v14 = vpop.permute.xlu1 %1134  ;;  %v997_v35 = vpop.f32.mrf.mxu1 }
 0x1c6   : > { %vm1171_vm10 = vcmp.eq.s32.totalorder %v3515_v56, %v1135_v14  ;;  %v4013_v36 = vadd.f32 %v997_v35, %v772_v33  ;;  %v2665_v38 = vpop.f32.mrf.mxu0 }
 0x1c7   : > { %2830 = vmatmul.mubr.msk.f32.gmra.mxu0 %vm1171_vm10, %v3075_v13  ;;  %v2745_v40 = vpop.f32.mrf.mxu1 }
 0x1c8   : > { %v4016_v41 = vadd.f32 %v2745_v40, %v2665_v38  ;;  %v782_v15 = vpop.f32.mrf.mxu0 }
 0x1c9   : > { %v1007_v3 = vpop.f32.mrf.mxu1 }
 0x1ca   : > { %v1601_v43 = vpop.permute.xlu1 %1600  ;;  %v4018_v44 = vadd.f32 %v1007_v3, %v782_v15  ;;  %v2668_v45 = vpop.f32.mrf.mxu0 }
 0x1cb   : > { %vm1637_vm11 = vcmp.eq.s32.totalorder %v3515_v56, %v1601_v43  ;;  %v2748_v2 = vpop.f32.mrf.mxu1 }
 0x1cc   : > { %2910 = vmatmul.mubr.msk.f32.gmra.mxu1 %vm1637_vm11, %v3075_v13  ;;  %v4022_v28 = vadd.f32 %v2748_v2, %v2668_v45  ;;  %v792_v50 = vpop.f32.mrf.mxu0 }
 0x1cd   : > { %v1017_v21 = vpop.f32.mrf.mxu1 }
 0x1ce   : > { %v4024_v4 = vadd.f32 %v1017_v21, %v792_v50  ;;  %v2671_v51 = vpop.f32.mrf.mxu0 }
 0x1cf   : > { %v1138_v52 = vpop.permute.xlu1 %1137  ;;  %v2751_v6 = vpop.f32.mrf.mxu1 }
 0x1d0   : > { %vm1172_vm13 = vcmp.eq.s32.totalorder %v3515_v56, %v1138_v52  ;;  %v4028_v53 = vadd.f32 %v2751_v6, %v2671_v51  ;;  %v802_v46 = vpop.f32.mrf.mxu0 }
 0x1d1   : > { %2832 = vmatprep.mubr.msk.f32.mxu0 %vm1172_vm13, %v3075_v13  ;;  %v1027_v54 = vpop.f32.mrf.mxu1 }
 0x1d2   : > { %2833 = vmatmul.mubr.msk.f32.gmra.mxu0 %vm1173_vm12, %v3075_v13  ;;  %v4032_v57 = vadd.f32 %v1027_v54, %v802_v46  ;;  %v2674_v17 = vpop.f32.mrf.mxu0 }
 0x1d3   : > { %v2754_v10 = vpop.f32.mrf.mxu1 }
 0x1d4   : > { %v1604_v61 = vpop.permute.xlu1 %1603  ;;  %v4034_v58 = vadd.f32 %v2754_v10, %v2674_v17  ;;  %v812_v63 = vpop.f32.mrf.mxu0 }
 0x1d5   : > { %vm1638_vm14 = vcmp.eq.s32.totalorder %v3515_v56, %v1604_v61  ;;  %v1037_v18 = vpop.f32.mrf.mxu1 }
 0x1d6   : > { %2912 = vmatprep.mubr.msk.f32.mxu1 %vm1638_vm14, %v3075_v13  ;;  %v4038_v11 = vadd.f32 %v1037_v18, %v812_v63 }
 0x1d8   : > { %v1607_v22 = vpop.permute.xlu1 %1606 }
 0x1d9   : > { %vm1639_vm15 = vcmp.eq.s32.totalorder %v3515_v56, %v1607_v22 }
 0x1da   : > { %2913 = vmatmul.mubr.msk.f32.gmra.mxu1 %vm1639_vm15, %v3075_v13 }
 0x1e0   : > { %v2789_v27 = vpop.f32.mrf.mxu0 }
 0x1e1   : > { %v1481_v33 = vadd.f32 %v2789_v27, %v893_v23 }
 0x1e2   : > { %v1321_v37 = vpop.f32.mrf.mxu0 }
 0x1e3   : > { %v1480_v35 = vadd.f32 %v1321_v37, %v888_v47 }
 0x1e4   : > { %v2869_v14 = vpop.f32.mrf.mxu1 }
 0x1e5   : > { %v1947_v38 = vadd.f32 %v2869_v14, %v1481_v33 }
 0x1e6   : > { %v1787_v40 = vpop.f32.mrf.mxu1 }
 0x1e7   : > { %1979 = vst [vmem:[%s4049_s29 + $0x8] sm:$0xff] %v1947_v38  ;;  %v1946_v56 = vadd.f32 %v1787_v40, %v1480_v35 }
 0x1e9   : > { %1978 = vst [vmem:[%s4049_s29] sm:$0xff] %v1946_v56 }
 0x1ed   : > { %v2872_v13 = vpop.f32.mrf.mxu1 }
 0x1ef   : > { %v2792_v9 = vpop.f32.mrf.mxu0  ;;  %v1797_v3 = vpop.f32.mrf.mxu1 }
 0x1f0   : > { %v1483_v7 = vadd.f32 %v2792_v9, %v3936_v59 }
 0x1f1   : > { %v1331_v26 = vpop.f32.mrf.mxu0 }
 0x1f2   : > { %v1949_v8 = vadd.f32 %v2872_v13, %v1483_v7  ;;  %v1482_v15 = vadd.f32 %v1331_v26, %v3940_v62 }
 0x1f4   : > { %1981 = vst [vmem:[%s4049_s29 + $0x18] sm:$0xff] %v1949_v8  ;;  %v1948_v43 = vadd.f32 %v1797_v3, %v1482_v15  ;;  %v2795_v45 = vpop.f32.mrf.mxu0 }
 0x1f5   : > { %v1485_v2 = vadd.f32 %v2795_v45, %v3942_v1 }
 0x1f6   : > { %1980 = vst [vmem:[%s4049_s29 + $0x10] sm:$0xff] %v1948_v43  ;;  %v1341_v48 = vpop.f32.mrf.mxu0 }
 0x1f7   : > { %v1484_v50 = vadd.f32 %v1341_v48, %v3949_v12  ;;  %v2875_v21 = vpop.f32.mrf.mxu1 }
 0x1f8   : > { %v1951_v51 = vadd.f32 %v2875_v21, %v1485_v2 }
 0x1f9   : > { %v1807_v59 = vpop.f32.mrf.mxu1 }
 0x1fa   : > { %1983 = vst [vmem:[%s4049_s29 + $0x28] sm:$0xff] %v1951_v51  ;;  %v1950_v52 = vadd.f32 %v1807_v59, %v1484_v50 }
 0x1fc   : > { %1982 = vst [vmem:[%s4049_s29 + $0x20] sm:$0xff] %v1950_v52 }
 0x1fd   : > { %v2798_v6 = vpop.f32.mrf.mxu0 }
 0x1fe   : > { %v1487_v46 = vadd.f32 %v2798_v6, %v3954_v24 }
 0x1ff   : > { %v1351_v62 = vpop.f32.mrf.mxu0 }
 0x200   : > { %v1486_v1 = vadd.f32 %v1351_v62, %v3957_v30 }
 0x205   : > { %v2878_v54 = vpop.f32.mrf.mxu1 }
 0x206   : > { %v1953_v17 = vadd.f32 %v2878_v54, %v1487_v46 }
 0x207   : > { %v1817_v10 = vpop.f32.mrf.mxu1 }
 0x208   : > { %1985 = vst [vmem:[%s4049_s29 + $0x38] sm:$0xff] %v1953_v17  ;;  %v1952_v12 = vadd.f32 %v1817_v10, %v1486_v1 }
 0x20a   : > { %1984 = vst [vmem:[%s4049_s29 + $0x30] sm:$0xff] %v1952_v12  ;;  %v2801_v61 = vpop.f32.mrf.mxu0 }
 0x20b   : > { %v1489_v18 = vadd.f32 %v2801_v61, %v3960_v34 }
 0x20c   : > { %v1361_v63 = vpop.f32.mrf.mxu0 }
 0x20d   : > { %v1488_v27 = vadd.f32 %v1361_v63, %v3965_v39 }
 0x20f   : > { %v2881_v22 = vpop.f32.mrf.mxu1 }
 0x210   : > { %v1955_v23 = vadd.f32 %v2881_v22, %v1489_v18 }
 0x211   : > { %v1827_v24 = vpop.f32.mrf.mxu1 }
 0x212   : > { %1987 = vst [vmem:[%s4049_s29 + $0x48] sm:$0xff] %v1955_v23  ;;  %v1954_v37 = vadd.f32 %v1827_v24, %v1488_v27 }
 0x214   : > { %1986 = vst [vmem:[%s4049_s29 + $0x40] sm:$0xff] %v1954_v37 }
 0x215   : > { %v2804_v30 = vpop.f32.mrf.mxu0 }
 0x216   : > { %v1491_v33 = vadd.f32 %v2804_v30, %v3968_v42 }
 0x217   : > { %v1371_v47 = vpop.f32.mrf.mxu0 }
 0x218   : > { %v1490_v35 = vadd.f32 %v1371_v47, %v3971_v16 }
 0x21d   : > { %v2884_v14 = vpop.f32.mrf.mxu1 }
 0x21e   : > { %v1957_v38 = vadd.f32 %v2884_v14, %v1491_v33 }
 0x21f   : > { %v1837_v34 = vpop.f32.mrf.mxu1 }
 0x220   : > { %1989 = vst [vmem:[%s4049_s29 + $0x58] sm:$0xff] %v1957_v38  ;;  %v1956_v40 = vadd.f32 %v1837_v34, %v1490_v35 }
 0x222   : > { %1988 = vst [vmem:[%s4049_s29 + $0x50] sm:$0xff] %v1956_v40  ;;  %v2807_v39 = vpop.f32.mrf.mxu0 }
 0x223   : > { %v1493_v13 = vadd.f32 %v2807_v39, %v3974_v29 }
 0x224   : > { %v1381_v56 = vpop.f32.mrf.mxu0 }
 0x225   : > { %v1492_v7 = vadd.f32 %v1381_v56, %v3976_v49 }
 0x227   : > { %v2887_v9 = vpop.f32.mrf.mxu1 }
 0x228   : > { %v1959_v26 = vadd.f32 %v2887_v9, %v1493_v13 }
 0x229   : > { %v1847_v42 = vpop.f32.mrf.mxu1 }
 0x22a   : > { %1991 = vst [vmem:[%s4049_s29 + $0x68] sm:$0xff] %v1959_v26  ;;  %v1958_v8 = vadd.f32 %v1847_v42, %v1492_v7 }
 0x22c   : > { %1990 = vst [vmem:[%s4049_s29 + $0x60] sm:$0xff] %v1958_v8 }
 0x22d   : > { %v2810_v16 = vpop.f32.mrf.mxu0 }
 0x22e   : > { %v1495_v3 = vadd.f32 %v2810_v16, %v3980_v19 }
 0x22f   : > { %v1391_v15 = vpop.f32.mrf.mxu0 }
 0x230   : > { %v1494_v45 = vadd.f32 %v1391_v15, %v3982_v5 }
 0x235   : > { %v2890_v43 = vpop.f32.mrf.mxu1 }
 0x236   : > { %v1961_v2 = vadd.f32 %v2890_v43, %v1495_v3 }
 0x237   : > { %v1857_v29 = vpop.f32.mrf.mxu1 }
 0x238   : > { %1993 = vst [vmem:[%s4049_s29 + $0x78] sm:$0xff] %v1961_v2  ;;  %v1960_v48 = vadd.f32 %v1857_v29, %v1494_v45 }
 0x23a   : > { %1992 = vst [vmem:[%s4049_s29 + $0x70] sm:$0xff] %v1960_v48  ;;  %v2813_v49 = vpop.f32.mrf.mxu0 }
 0x23b   : > { %v1497_v21 = vadd.f32 %v2813_v49, %v3985_v20 }
 0x23c   : > { %v1401_v50 = vpop.f32.mrf.mxu0 }
 0x23d   : > { %v1496_v59 = vadd.f32 %v1401_v50, %v3993_v55 }
 0x23f   : > { %v2893_v51 = vpop.f32.mrf.mxu1 }
 0x240   : > { %v1963_v52 = vadd.f32 %v2893_v51, %v1497_v21 }
 0x241   : > { %v1867_v19 = vpop.f32.mrf.mxu1 }
 0x242   : > { %1995 = vst [vmem:[%s4049_s29 + $0x88] sm:$0xff] %v1963_v52  ;;  %v1962_v6 = vadd.f32 %v1867_v19, %v1496_v59 }
 0x244   : > { %1994 = vst [vmem:[%s4049_s29 + $0x80] sm:$0xff] %v1962_v6 }
 0x245   : > { %v2816_v5 = vpop.f32.mrf.mxu0 }
 0x246   : > { %v1499_v46 = vadd.f32 %v2816_v5, %v3996_v60 }
 0x247   : > { %v1411_v62 = vpop.f32.mrf.mxu0 }
 0x248   : > { %v1498_v1 = vadd.f32 %v1411_v62, %v4000_v0 }
 0x24e   : > { %v2896_v54 = vpop.f32.mrf.mxu1 }
 0x24f   : > { %v1965_v17 = vadd.f32 %v2896_v54, %v1499_v46 }
 0x250   : > { %v1877_v20 = vpop.f32.mrf.mxu1 }
 0x251   : > { %1997 = vst [vmem:[%s4049_s29 + $0x98] sm:$0xff] %v1965_v17  ;;  %v1964_v10 = vadd.f32 %v1877_v20, %v1498_v1 }
 0x253   : > { %1996 = vst [vmem:[%s4049_s29 + $0x90] sm:$0xff] %v1964_v10 }
 0x256   : > { %v2819_v55 = vpop.f32.mrf.mxu0 }
 0x257   : > { %v1501_v61 = vadd.f32 %v2819_v55, %v4002_v31 }
 0x258   : > { %v1421_v12 = vpop.f32.mrf.mxu0 }
 0x259   : > { %v1500_v18 = vadd.f32 %v1421_v12, %v4007_v25 }
 0x25c   : > { %v2899_v63 = vpop.f32.mrf.mxu1 }
 0x25d   : > { %v1967_v22 = vadd.f32 %v2899_v63, %v1501_v61 }
 0x25e   : > { %v1887_v60 = vpop.f32.mrf.mxu1 }
 0x25f   : > { %1999 = vst [vmem:[%s4049_s29 + $0xa8] sm:$0xff] %v1967_v22  ;;  %v1966_v27 = vadd.f32 %v1887_v60, %v1500_v18 }
 0x261   : > { %1998 = vst [vmem:[%s4049_s29 + $0xa0] sm:$0xff] %v1966_v27 }
 0x262   : > { %v2822_v0 = vpop.f32.mrf.mxu0 }
 0x263   : > { %v1503_v24 = vadd.f32 %v2822_v0, %v4010_v32 }
 0x264   : > { %v1431_v23 = vpop.f32.mrf.mxu0 }
 0x265   : > { %v1502_v30 = vadd.f32 %v1431_v23, %v4013_v36 }
 0x26a   : > { %v2902_v37 = vpop.f32.mrf.mxu1 }
 0x26b   : > { %v1969_v47 = vadd.f32 %v2902_v37, %v1503_v24 }
 0x26c   : > { %v1897_v31 = vpop.f32.mrf.mxu1 }
 0x26d   : > { %2001 = vst [vmem:[%s4049_s29 + $0xb8] sm:$0xff] %v1969_v47  ;;  %v1968_v33 = vadd.f32 %v1897_v31, %v1502_v30 }
 0x26f   : > { %2000 = vst [vmem:[%s4049_s29 + $0xb0] sm:$0xff] %v1968_v33  ;;  %v2825_v25 = vpop.f32.mrf.mxu0 }
 0x270   : > { %v1505_v35 = vadd.f32 %v2825_v25, %v4016_v41 }
 0x271   : > { %v1441_v14 = vpop.f32.mrf.mxu0 }
 0x272   : > { %v1504_v34 = vadd.f32 %v1441_v14, %v4018_v44 }
 0x274   : > { %v2905_v38 = vpop.f32.mrf.mxu1 }
 0x275   : > { %v1971_v40 = vadd.f32 %v2905_v38, %v1505_v35 }
 0x276   : > { %v1907_v32 = vpop.f32.mrf.mxu1 }
 0x277   : > { %2003 = vst [vmem:[%s4049_s29 + $0xc8] sm:$0xff] %v1971_v40  ;;  %v1970_v39 = vadd.f32 %v1907_v32, %v1504_v34 }
 0x279   : > { %2002 = vst [vmem:[%s4049_s29 + $0xc0] sm:$0xff] %v1970_v39 }
 0x27a   : > { %v2828_v36 = vpop.f32.mrf.mxu0 }
 0x27b   : > { %v1507_v13 = vadd.f32 %v2828_v36, %v4022_v28 }
 0x27c   : > { %v1451_v56 = vpop.f32.mrf.mxu0 }
 0x27d   : > { %v1506_v7 = vadd.f32 %v1451_v56, %v4024_v4 }
 0x282   : > { %v2908_v9 = vpop.f32.mrf.mxu1 }
 0x283   : > { %v1973_v26 = vadd.f32 %v2908_v9, %v1507_v13 }
 0x284   : > { %v1917_v41 = vpop.f32.mrf.mxu1 }
 0x285   : > { %2005 = vst [vmem:[%s4049_s29 + $0xd8] sm:$0xff] %v1973_v26  ;;  %v1972_v42 = vadd.f32 %v1917_v41, %v1506_v7 }
 0x287   : > { %2004 = vst [vmem:[%s4049_s29 + $0xd0] sm:$0xff] %v1972_v42  ;;  %v2831_v44 = vpop.f32.mrf.mxu0 }
 0x288   : > { %v1509_v16 = vadd.f32 %v2831_v44, %v4028_v53 }
 0x289   : > { %v1461_v8 = vpop.f32.mrf.mxu0 }
 0x28a   : > { %v1508_v3 = vadd.f32 %v1461_v8, %v4032_v57 }
 0x28c   : > { %v2911_v15 = vpop.f32.mrf.mxu1 }
 0x28d   : > { %v1975_v43 = vadd.f32 %v2911_v15, %v1509_v16 }
 0x28e   : > { %v1927_v28 = vpop.f32.mrf.mxu1 }
 0x28f   : > { %2007 = vst [vmem:[%s4049_s29 + $0xe8] sm:$0xff] %v1975_v43  ;;  %v1974_v4 = vadd.f32 %v1927_v28, %v1508_v3 }
 0x291   : > { %2006 = vst [vmem:[%s4049_s29 + $0xe0] sm:$0xff] %v1974_v4 }
 0x292   : > { %v2834_v45 = vpop.f32.mrf.mxu0 }
 0x293   : > { %v1511_v29 = vadd.f32 %v2834_v45, %v4034_v58 }
 0x294   : > { %v1471_v2 = vpop.f32.mrf.mxu0 }
 0x295   : > { %v1510_v53 = vadd.f32 %v1471_v2, %v4038_v11 }
 0x29a   : > { %v2914_v48 = vpop.f32.mrf.mxu1 }
 0x29b   : > { %v1977_v49 = vadd.f32 %v2914_v48, %v1511_v29 }
 0x29c   : > { %v1937_v57 = vpop.f32.mrf.mxu1 }
 0x29d   : > { %2009 = vst [vmem:[%s4049_s29 + $0xf8] sm:$0xff] %v1977_v49  ;;  %v1976_v50 = vadd.f32 %v1937_v57, %v1510_v53 }
 0x29f   : > { %2008 = vst [vmem:[%s4049_s29 + $0xf0] sm:$0xff] %v1976_v50 }
 0x2a0   : > { %3022 = shalt.err (!%p3019_p3)
}
 0x2a1   : > { %s3023_s17 = scalar_lea.hbm %s4116_s6, 4096  ;;  %s3027_s23 = scalar_lea.hbm %s4166_s2, 16384 }
 0x2a2   : > { %p3024_p4 = scmp.ne.s32.totalorder %s4116_s6, %s3023_s17  ;;  %p3028_p9 = scmp.lt.s32.totalorder %s4116_s6, %s4166_s2 }
 0x2a3   : > { %p3029_p10 = scmp.lt.s32.totalorder %s3027_s23, %s3023_s17 }
 0x2a4   : > { %p3025_p7 = pnand %p3024_p4, %p3132_p5 }
 0x2a5   : > { %p3030_p11 = por %p3029_p10, %p3028_p9 }
 0x2a6   : > { %p3026_p8 = pneg %p3025_p7 }
 0x2a8   : > { %p3031_p12 = pnand %p3030_p11, %p3026_p8 }
 0x2aa   : > { %3034 = shalt.err (!%p3031_p12)
}
 0x2ab   : > { %s3077_s27 = smov 128   ;;  %s3078_s25 = smov 8  }
 0x2ac   : > { %2915 = dma.vmem_to_hbm [thread:$0]  (%p3132_p5), %s4118_s3, 4096, %s4116_s6, %s4124_s13, %s3077_s27, %s3077_s27, %s3078_s25  }
 0x2ad PF: > { %p2921_p13 = scmp.ge.s32.totalorder %s3069_s12, 2  ;;  %s2039_s28 = sand.u32 1, %s3057_s9  }
 0x2ae   : > { %s2040_s29 = scalar_lea.sflag [#allocation3], %s2039_s28 }
 0x2af   : > { %p2918_p0 = pnand %p2921_p13, %p3136_p6 }
 0x2b1   : > { %p2919_p1 = pneg %p2918_p0 }
 0x2b3   : > { %3052 = dma.done.wait (%p2919_p1), %s2040_s29, 4096  }
 0x2b4   : > { %3054 = vsyncadd (%p2919_p1), %s2040_s29, 4294963200  ;;  %p12_p2 = scmp.ge.s32.totalorder %s3119_s15, 6   ;;  %s4169_s9 = smov %s3061_s10 }
 0x2b5   : > { %s4170_s10 = smov %s3065_s11  ;;  %s4171_s11 = smov %s3130_s18 }
 0x2b6   : > { %s4172_s12 = smov %s3119_s15  ;;  %14 = sbr.rel (!%p12_p2) target bundleno = 3 (0x3), region = 66 }
 0x2bb   :  { %2045 = vsyncpa [#allocation3], 1 }
 0x2bc   :  { %2047 = vsyncpa [#allocation3 + $0x1], 1 }

</bundles_post_ra>
